<compile_context>
chip_gen: v5e
topology: v5e:2x2
jax: 0.10.0
libtpu: 0.0.40
codegen_flags: <defaults>
</compile_context>

<pallas_src>
import functools

import jax
import jax.numpy as jnp
from jax import lax
from jax.experimental import pallas as pl
from jax.experimental.pallas import tpu as pltpu


def _round_up(x, m):
    return (x + m - 1) // m * m


def _ddrqn_kernel(
    x2_ref,      # (S*Bp, D)   time-flattened, batch-padded input
    h0_ref,      # (Bp, Hp)    initial hidden state (padded)
    wi_ref,      # (D, 3*Hp)   fused+padded [W_ir | W_iz | W_in]
    wh_ref,      # (Hp, 3*Hp)  fused+padded [W_hr | W_hz | W_hn]
    bi_ref,      # (1, 3*Hp)   fused [b_ir+b_hr | b_iz+b_hz | b_in]
    bhn_ref,     # (1, Hp)     b_hn (stays on h path: r gates it)
    wemb_ref,    # (Hp, Hp)
    bemb_ref,    # (1, Hp)
    wout_ref,    # (Hp, Op)
    bout_ref,    # (1, Op)
    out_ref,     # (Bp, Op)
    hlast_ref,   # (Bp, Hp)
    gi_scr,      # VMEM scratch (S*Bp, 3*Hp)
):
    Bp, Hp = h0_ref.shape
    S = x2_ref.shape[0] // Bp

    # Hoist loop invariants: recurrent weights and the pre-broadcast n-gate bias.
    w_h = wh_ref[...]                                    # (Hp, 3Hp)
    b_hn = jnp.broadcast_to(bhn_ref[...], (Bp, Hp))      # broadcast once, not per step

    # All input projections in ONE batched MXU matmul, off the serial chain.
    # (r/z h-side biases are already folded into bi.)
    gi_scr[...] = (
        jnp.dot(x2_ref[...], wi_ref[...], preferred_element_type=jnp.float32)
        + bi_ref[...]
    )

    # Fully-unrolled recurrence; static Python indices -> tile-aligned,
    # zero-cost row-block slices (each step's block is exactly one sublane
    # tile; each gate slice starts at a multiple of 128 lanes).
    h = h0_ref[...]                                      # (Bp, Hp)
    for t in range(S):
        gi = gi_scr[t * Bp:(t + 1) * Bp, :]              # (Bp, 3Hp)
        gh = jnp.dot(h, w_h, preferred_element_type=jnp.float32)  # (Bp, 3Hp)
        # PyTorch GRU cell:
        #   r = sigmoid(gi_r + gh_r);  z = sigmoid(gi_z + gh_z)
        #   n = tanh(gi_n + r * (gh_n + b_hn));  h = (1-z)*n + z*h
        r = jax.nn.sigmoid(gi[:, 0:Hp] + gh[:, 0:Hp])
        z = jax.nn.sigmoid(gi[:, Hp:2 * Hp] + gh[:, Hp:2 * Hp])
        n = jnp.tanh(gi[:, 2 * Hp:] + r * (gh[:, 2 * Hp:] + b_hn))
        h = (1.0 - z) * n + z * h

    # Head: ReLU(Linear(h_last)) -> Linear, fused into the same kernel.
    emb = jnp.dot(h, wemb_ref[...], preferred_element_type=jnp.float32) + bemb_ref[...]
    emb = jnp.maximum(emb, 0.0)
    out_ref[...] = (
        jnp.dot(emb, wout_ref[...], preferred_element_type=jnp.float32) + bout_ref[...]
    )
    hlast_ref[...] = h


@functools.partial(jax.jit, static_argnames=("H", "O"))
def _ddrqn_forward_impl(x, hc, fused, *, H, O):
    S, B, D = x.shape
    Bp = _round_up(B, 8)
    Hp = _round_up(H, 128)
    Op = _round_up(O, 128)

    x = x.astype(jnp.float32)
    # Pad batch to a full sublane tile and flatten time*batch (host-side, free).
    x_p = jnp.zeros((S, Bp, D), jnp.float32).at[:, :B, :].set(x)
    x2 = x_p.reshape(S * Bp, D)

    if hc is None:
        h0 = jnp.zeros((Bp, Hp), jnp.float32)
    else:
        h0 = jnp.zeros((Bp, Hp), jnp.float32).at[:B, :H].set(hc[0].astype(jnp.float32))

    inputs = (x2, h0, fused["wi"], fused["wh"], fused["bi"], fused["bhn"],
              fused["wemb"], fused["bemb"], fused["wout"], fused["bout"])

    vmem = pl.BlockSpec(memory_space=pltpu.MemorySpace.VMEM)

    flops = (2 * (S * Bp) * D * (3 * Hp)              # batched input projection
             + S * 2 * Bp * Hp * (3 * Hp)             # recurrent matmuls
             + 2 * Bp * Hp * Hp + 2 * Bp * Hp * Op)   # head
    bytes_accessed = 4 * (sum(a.size for a in inputs) + Bp * Op + Bp * Hp)

    out_p, h_p = pl.pallas_call(
        _ddrqn_kernel,
        out_shape=(
            jax.ShapeDtypeStruct((Bp, Op), jnp.float32),
            jax.ShapeDtypeStruct((Bp, Hp), jnp.float32),
        ),
        in_specs=[vmem] * len(inputs),
        out_specs=(vmem, vmem),
        scratch_shapes=[pltpu.VMEM((S * Bp, 3 * Hp), jnp.float32)],
        cost_estimate=pl.CostEstimate(
            flops=flops,
            transcendentals=S * Bp * 3 * Hp,
            bytes_accessed=bytes_accessed,
        ),
    )(*inputs)

    # Strip batch / lane padding.
    return out_p[:B, :O], h_p[None, :B, :H]


def ddrqn_forward(x, params, hc=None):
    """x: (seq, batch, input). Returns (out (batch, out_size), hc (1, batch, hidden))."""
    _, H, O = params["dims"]
    return _ddrqn_forward_impl(x, hc, params["fused"], H=H, O=O)


def init_params(key, input_size, hidden_size, output_size):
    """Deterministic init matching the PyTorch parameter shapes (uniform +-1/sqrt(H)).

    Gate weights/biases are fused and lane-padded ONCE here (not per forward).
    """
    ks = jax.random.split(key, 16)
    s = 1.0 / jnp.sqrt(hidden_size)
    u = lambda k, shape: jax.random.uniform(k, shape, jnp.float32, -s, s)
    D, H, O = input_size, hidden_size, output_size
    # GRU weights stored pre-transposed as (in_features, H) for row-major matmul.
    raw = {
        "w_ir": u(ks[0], (D, H)), "w_iz": u(ks[1], (D, H)), "w_in": u(ks[2], (D, H)),
        "w_hr": u(ks[3], (H, H)), "w_hz": u(ks[4], (H, H)), "w_hn": u(ks[5], (H, H)),
        "b_ir": u(ks[6], (1, H)), "b_iz": u(ks[7], (1, H)), "b_in": u(ks[8], (1, H)),
        "b_hr": u(ks[9], (1, H)), "b_hz": u(ks[10], (1, H)), "b_hn": u(ks[11], (1, H)),
        "w_emb": u(ks[12], (H, H)), "b_emb": u(ks[13], (1, H)),
        "w_out": u(ks[14], (H, O)), "b_out": u(ks[15], (1, O)),
    }

    Hp = _round_up(H, 128)
    Op = _round_up(O, 128)

    def pad2(a, rows, cols):
        r, c = a.shape
        return jnp.zeros((rows, cols), jnp.float32).at[:r, :c].set(a)

    fused = {
        # Each gate block padded to Hp lanes so gate slices are 128-lane aligned.
        "wi": jnp.concatenate([pad2(raw["w_ir"], D, Hp),
                               pad2(raw["w_iz"], D, Hp),
                               pad2(raw["w_in"], D, Hp)], axis=1),      # (D, 3Hp)
        "wh": jnp.concatenate([pad2(raw["w_hr"], Hp, Hp),
                               pad2(raw["w_hz"], Hp, Hp),
                               pad2(raw["w_hn"], Hp, Hp)], axis=1),     # (Hp, 3Hp)
        # b_hr / b_hz folded into the input-side bias (only b_hn is gated by r).
        "bi": jnp.concatenate([pad2(raw["b_ir"] + raw["b_hr"], 1, Hp),
                               pad2(raw["b_iz"] + raw["b_hz"], 1, Hp),
                               pad2(raw["b_in"], 1, Hp)], axis=1),      # (1, 3Hp)
        "bhn": pad2(raw["b_hn"], 1, Hp),                                # (1, Hp)
        "wemb": pad2(raw["w_emb"], Hp, Hp),
        "bemb": pad2(raw["b_emb"], 1, Hp),
        "wout": pad2(raw["w_out"], Hp, Op),
        "bout": pad2(raw["b_out"], 1, Op),
    }
    return {"raw": raw, "fused": fused, "dims": (D, H, O)}


def ddrqn_reference(x, raw, hc=None):
    """Pure-JAX reference (lax.scan GRU) for correctness checking."""
    def step(h, x_t):
        r = jax.nn.sigmoid(x_t @ raw["w_ir"] + raw["b_ir"] + h @ raw["w_hr"] + raw["b_hr"])
        z = jax.nn.sigmoid(x_t @ raw["w_iz"] + raw["b_iz"] + h @ raw["w_hz"] + raw["b_hz"])
        n = jnp.tanh(x_t @ raw["w_in"] + raw["b_in"] + r * (h @ raw["w_hn"] + raw["b_hn"]))
        h_new = (1.0 - z) * n + z * h
        return h_new, None

    B = x.shape[1]
    H = raw["w_hr"].shape[0]
    h0 = jnp.zeros((B, H), jnp.float32) if hc is None else hc[0]
    h_last, _ = lax.scan(step, h0, x)
    emb = jnp.maximum(h_last @ raw["w_emb"] + raw["b_emb"], 0.0)
    out = emb @ raw["w_out"] + raw["b_out"]
    return out, h_last[None]


if __name__ == "__main__":
    SEQ, BATCH, INPUT, HIDDEN, OUTPUT = 8, 2, 16, 32, 4

    key = jax.random.PRNGKey(0)
    k_x, k_p, k_h = jax.random.split(key, 3)
    x = jax.random.normal(k_x, (SEQ, BATCH, INPUT), jnp.float32)
    params = init_params(k_p, INPUT, HIDDEN, OUTPUT)

    # Case 1: default (hc = None -> zeros)
    out, hc = jax.block_until_ready(ddrqn_forward(x, params))
    out_ref, hc_ref = ddrqn_reference(x, params["raw"])
    assert out.shape == (BATCH, OUTPUT)
    assert hc.shape == (1, BATCH, HIDDEN)
    assert jnp.allclose(out, out_ref, atol=1e-5, rtol=1e-5)
    assert jnp.allclose(hc, hc_ref, atol=1e-5, rtol=1e-5)

    # Case 2: caller-provided initial hidden state
    hc0 = 0.1 * jax.random.normal(k_h, (1, BATCH, HIDDEN), jnp.float32)
    out2, hc2 = jax.block_until_ready(ddrqn_forward(x, params, hc0))
    out2_ref, hc2_ref = ddrqn_reference(x, params["raw"], hc0)
    assert jnp.allclose(out2, out2_ref, atol=1e-5, rtol=1e-5)
    assert jnp.allclose(hc2, hc2_ref, atol=1e-5, rtol=1e-5)

    print("KERNEL_OK")
</pallas_src>

<mosaic_0001>
module attributes {stable_mosaic.version = 11 : i64} {
  func.func @_ddrqn_kernel(%arg0: memref<64x16xf32, #tpu.memory_space<vmem>>, %arg1: memref<8x128xf32, #tpu.memory_space<vmem>>, %arg2: memref<16x384xf32, #tpu.memory_space<vmem>>, %arg3: memref<128x384xf32, #tpu.memory_space<vmem>>, %arg4: memref<1x384xf32, #tpu.memory_space<vmem>>, %arg5: memref<1x128xf32, #tpu.memory_space<vmem>>, %arg6: memref<128x128xf32, #tpu.memory_space<vmem>>, %arg7: memref<1x128xf32, #tpu.memory_space<vmem>>, %arg8: memref<128x128xf32, #tpu.memory_space<vmem>>, %arg9: memref<1x128xf32, #tpu.memory_space<vmem>>, %arg10: memref<8x128xf32, #tpu.memory_space<vmem>>, %arg11: memref<8x128xf32, #tpu.memory_space<vmem>>, %arg12: memref<64x384xf32, #tpu.memory_space<vmem>>) attributes {dimension_semantics = [], scalar_prefetch = 0 : i64, scratch_operands = 1 : i64, tpu.core_type = #tpu.core_type<tc>} {
    %c0 = arith.constant 0 : index
    %c0_0 = arith.constant 0 : index
    %0 = vector.load %arg3[%c0, %c0_0] : memref<128x384xf32, #tpu.memory_space<vmem>>, vector<128x384xf32>
    %c0_1 = arith.constant 0 : index
    %c0_2 = arith.constant 0 : index
    %1 = vector.load %arg5[%c0_1, %c0_2] : memref<1x128xf32, #tpu.memory_space<vmem>>, vector<1x128xf32>
    %2 = vector.shape_cast %1 : vector<1x128xf32> to vector<1x128xf32>
    %3 = vector.broadcast %2 : vector<1x128xf32> to vector<8x128xf32>
    %c0_3 = arith.constant 0 : index
    %c0_4 = arith.constant 0 : index
    %4 = vector.load %arg0[%c0_3, %c0_4] : memref<64x16xf32, #tpu.memory_space<vmem>>, vector<64x16xf32>
    %c0_5 = arith.constant 0 : index
    %c0_6 = arith.constant 0 : index
    %5 = vector.load %arg2[%c0_5, %c0_6] : memref<16x384xf32, #tpu.memory_space<vmem>>, vector<16x384xf32>
    %cst = arith.constant dense<0.000000e+00> : vector<64x384xf32>
    %6 = tpu.matmul %4, %5, %cst {dimension_numbers = #tpu.dot_dimension_numbers<[1], [0], [0], [1], [0, 0, 1, 1], [], []>} : vector<64x16xf32>, vector<16x384xf32>, vector<64x384xf32> -> vector<64x384xf32>
    %c0_7 = arith.constant 0 : index
    %c0_8 = arith.constant 0 : index
    %7 = vector.load %arg4[%c0_7, %c0_8] : memref<1x384xf32, #tpu.memory_space<vmem>>, vector<1x384xf32>
    %8 = vector.broadcast %7 : vector<1x384xf32> to vector<64x384xf32>
    %9 = arith.addf %6, %8 : vector<64x384xf32>
    %c0_9 = arith.constant 0 : index
    %c0_10 = arith.constant 0 : index
    %10 = vector.load %arg12[%c0_9, %c0_10] : memref<64x384xf32, #tpu.memory_space<vmem>>, vector<64x384xf32>
    tpu.vector_store %arg12[%c0_9, %c0_10], %9 {strides = array<i32>} : memref<64x384xf32, #tpu.memory_space<vmem>>, vector<64x384xf32>,
    %c0_11 = arith.constant 0 : index
    %c0_12 = arith.constant 0 : index
    %11 = vector.load %arg1[%c0_11, %c0_12] : memref<8x128xf32, #tpu.memory_space<vmem>>, vector<8x128xf32>
    %c0_13 = arith.constant 0 : index
    %c0_14 = arith.constant 0 : index
    %12 = vector.load %arg12[%c0_13, %c0_14] : memref<64x384xf32, #tpu.memory_space<vmem>>, vector<8x384xf32>
    %cst_15 = arith.constant dense<0.000000e+00> : vector<8x384xf32>
    %13 = tpu.matmul %11, %0, %cst_15 {dimension_numbers = #tpu.dot_dimension_numbers<[1], [0], [0], [1], [0, 0, 1, 1], [], []>} : vector<8x128xf32>, vector<128x384xf32>, vector<8x384xf32> -> vector<8x384xf32>
    %14 = vector.extract_strided_slice %12 {offsets = [0, 0], sizes = [8, 128], strides = [1, 1]} : vector<8x384xf32> to vector<8x128xf32>
    %15 = vector.extract_strided_slice %13 {offsets = [0, 0], sizes = [8, 128], strides = [1, 1]} : vector<8x384xf32> to vector<8x128xf32>
    %16 = arith.addf %14, %15 : vector<8x128xf32>
    %17 = arith.negf %16 : vector<8x128xf32>
    %18 = math.exp %17 : vector<8x128xf32>
    %cst_16 = arith.constant 1.000000e+00 : f32
    %19 = vector.broadcast %cst_16 : f32 to vector<8x128xf32>
    %20 = arith.addf %19, %18 : vector<8x128xf32>
    %21 = arith.divf %19, %20 : vector<8x128xf32>
    %22 = vector.extract_strided_slice %12 {offsets = [0, 128], sizes = [8, 128], strides = [1, 1]} : vector<8x384xf32> to vector<8x128xf32>
    %23 = vector.extract_strided_slice %13 {offsets = [0, 128], sizes = [8, 128], strides = [1, 1]} : vector<8x384xf32> to vector<8x128xf32>
    %24 = arith.addf %22, %23 : vector<8x128xf32>
    %25 = arith.negf %24 : vector<8x128xf32>
    %26 = math.exp %25 : vector<8x128xf32>
    %cst_17 = arith.constant 1.000000e+00 : f32
    %27 = vector.broadcast %cst_17 : f32 to vector<8x128xf32>
    %28 = arith.addf %27, %26 : vector<8x128xf32>
    %29 = arith.divf %27, %28 : vector<8x128xf32>
    %30 = vector.extract_strided_slice %12 {offsets = [0, 256], sizes = [8, 128], strides = [1, 1]} : vector<8x384xf32> to vector<8x128xf32>
    %31 = vector.extract_strided_slice %13 {offsets = [0, 256], sizes = [8, 128], strides = [1, 1]} : vector<8x384xf32> to vector<8x128xf32>
    %32 = arith.addf %31, %3 : vector<8x128xf32>
    %33 = arith.mulf %21, %32 : vector<8x128xf32>
    %34 = arith.addf %30, %33 : vector<8x128xf32>
    %35 = math.tanh %34 : vector<8x128xf32>
    %cst_18 = arith.constant 1.000000e+00 : f32
    %36 = vector.broadcast %cst_18 : f32 to vector<8x128xf32>
    %37 = arith.subf %36, %29 : vector<8x128xf32>
    %38 = arith.mulf %37, %35 : vector<8x128xf32>
    %39 = arith.mulf %29, %11 : vector<8x128xf32>
    %40 = arith.addf %38, %39 : vector<8x128xf32>
    %c8 = arith.constant 8 : index
    %c0_19 = arith.constant 0 : index
    %41 = vector.load %arg12[%c8, %c0_19] : memref<64x384xf32, #tpu.memory_space<vmem>>, vector<8x384xf32>
    %cst_20 = arith.constant dense<0.000000e+00> : vector<8x384xf32>
    %42 = tpu.matmul %40, %0, %cst_20 {dimension_numbers = #tpu.dot_dimension_numbers<[1], [0], [0], [1], [0, 0, 1, 1], [], []>} : vector<8x128xf32>, vector<128x384xf32>, vector<8x384xf32> -> vector<8x384xf32>
    %43 = vector.extract_strided_slice %41 {offsets = [0, 0], sizes = [8, 128], strides = [1, 1]} : vector<8x384xf32> to vector<8x128xf32>
    %44 = vector.extract_strided_slice %42 {offsets = [0, 0], sizes = [8, 128], strides = [1, 1]} : vector<8x384xf32> to vector<8x128xf32>
    %45 = arith.addf %43, %44 : vector<8x128xf32>
    %46 = arith.negf %45 : vector<8x128xf32>
    %47 = math.exp %46 : vector<8x128xf32>
    %cst_21 = arith.constant 1.000000e+00 : f32
    %48 = vector.broadcast %cst_21 : f32 to vector<8x128xf32>
    %49 = arith.addf %48, %47 : vector<8x128xf32>
    %50 = arith.divf %48, %49 : vector<8x128xf32>
    %51 = vector.extract_strided_slice %41 {offsets = [0, 128], sizes = [8, 128], strides = [1, 1]} : vector<8x384xf32> to vector<8x128xf32>
    %52 = vector.extract_strided_slice %42 {offsets = [0, 128], sizes = [8, 128], strides = [1, 1]} : vector<8x384xf32> to vector<8x128xf32>
    %53 = arith.addf %51, %52 : vector<8x128xf32>
    %54 = arith.negf %53 : vector<8x128xf32>
    %55 = math.exp %54 : vector<8x128xf32>
    %cst_22 = arith.constant 1.000000e+00 : f32
    %56 = vector.broadcast %cst_22 : f32 to vector<8x128xf32>
    %57 = arith.addf %56, %55 : vector<8x128xf32>
    %58 = arith.divf %56, %57 : vector<8x128xf32>
    %59 = vector.extract_strided_slice %41 {offsets = [0, 256], sizes = [8, 128], strides = [1, 1]} : vector<8x384xf32> to vector<8x128xf32>
    %60 = vector.extract_strided_slice %42 {offsets = [0, 256], sizes = [8, 128], strides = [1, 1]} : vector<8x384xf32> to vector<8x128xf32>
    %61 = arith.addf %60, %3 : vector<8x128xf32>
    %62 = arith.mulf %50, %61 : vector<8x128xf32>
    %63 = arith.addf %59, %62 : vector<8x128xf32>
    %64 = math.tanh %63 : vector<8x128xf32>
    %cst_23 = arith.constant 1.000000e+00 : f32
    %65 = vector.broadcast %cst_23 : f32 to vector<8x128xf32>
    %66 = arith.subf %65, %58 : vector<8x128xf32>
    %67 = arith.mulf %66, %64 : vector<8x128xf32>
    %68 = arith.mulf %58, %40 : vector<8x128xf32>
    %69 = arith.addf %67, %68 : vector<8x128xf32>
    %c16 = arith.constant 16 : index
    %c0_24 = arith.constant 0 : index
    %70 = vector.load %arg12[%c16, %c0_24] : memref<64x384xf32, #tpu.memory_space<vmem>>, vector<8x384xf32>
    %cst_25 = arith.constant dense<0.000000e+00> : vector<8x384xf32>
    %71 = tpu.matmul %69, %0, %cst_25 {dimension_numbers = #tpu.dot_dimension_numbers<[1], [0], [0], [1], [0, 0, 1, 1], [], []>} : vector<8x128xf32>, vector<128x384xf32>, vector<8x384xf32> -> vector<8x384xf32>
    %72 = vector.extract_strided_slice %70 {offsets = [0, 0], sizes = [8, 128], strides = [1, 1]} : vector<8x384xf32> to vector<8x128xf32>
    %73 = vector.extract_strided_slice %71 {offsets = [0, 0], sizes = [8, 128], strides = [1, 1]} : vector<8x384xf32> to vector<8x128xf32>
    %74 = arith.addf %72, %73 : vector<8x128xf32>
    %75 = arith.negf %74 : vector<8x128xf32>
    %76 = math.exp %75 : vector<8x128xf32>
    %cst_26 = arith.constant 1.000000e+00 : f32
    %77 = vector.broadcast %cst_26 : f32 to vector<8x128xf32>
    %78 = arith.addf %77, %76 : vector<8x128xf32>
    %79 = arith.divf %77, %78 : vector<8x128xf32>
    %80 = vector.extract_strided_slice %70 {offsets = [0, 128], sizes = [8, 128], strides = [1, 1]} : vector<8x384xf32> to vector<8x128xf32>
    %81 = vector.extract_strided_slice %71 {offsets = [0, 128], sizes = [8, 128], strides = [1, 1]} : vector<8x384xf32> to vector<8x128xf32>
    %82 = arith.addf %80, %81 : vector<8x128xf32>
    %83 = arith.negf %82 : vector<8x128xf32>
    %84 = math.exp %83 : vector<8x128xf32>
    %cst_27 = arith.constant 1.000000e+00 : f32
    %85 = vector.broadcast %cst_27 : f32 to vector<8x128xf32>
    %86 = arith.addf %85, %84 : vector<8x128xf32>
    %87 = arith.divf %85, %86 : vector<8x128xf32>
    %88 = vector.extract_strided_slice %70 {offsets = [0, 256], sizes = [8, 128], strides = [1, 1]} : vector<8x384xf32> to vector<8x128xf32>
    %89 = vector.extract_strided_slice %71 {offsets = [0, 256], sizes = [8, 128], strides = [1, 1]} : vector<8x384xf32> to vector<8x128xf32>
    %90 = arith.addf %89, %3 : vector<8x128xf32>
    %91 = arith.mulf %79, %90 : vector<8x128xf32>
    %92 = arith.addf %88, %91 : vector<8x128xf32>
    %93 = math.tanh %92 : vector<8x128xf32>
    %cst_28 = arith.constant 1.000000e+00 : f32
    %94 = vector.broadcast %cst_28 : f32 to vector<8x128xf32>
    %95 = arith.subf %94, %87 : vector<8x128xf32>
    %96 = arith.mulf %95, %93 : vector<8x128xf32>
    %97 = arith.mulf %87, %69 : vector<8x128xf32>
    %98 = arith.addf %96, %97 : vector<8x128xf32>
    %c24 = arith.constant 24 : index
    %c0_29 = arith.constant 0 : index
    %99 = vector.load %arg12[%c24, %c0_29] : memref<64x384xf32, #tpu.memory_space<vmem>>, vector<8x384xf32>
    %cst_30 = arith.constant dense<0.000000e+00> : vector<8x384xf32>
    %100 = tpu.matmul %98, %0, %cst_30 {dimension_numbers = #tpu.dot_dimension_numbers<[1], [0], [0], [1], [0, 0, 1, 1], [], []>} : vector<8x128xf32>, vector<128x384xf32>, vector<8x384xf32> -> vector<8x384xf32>
    %101 = vector.extract_strided_slice %99 {offsets = [0, 0], sizes = [8, 128], strides = [1, 1]} : vector<8x384xf32> to vector<8x128xf32>
    %102 = vector.extract_strided_slice %100 {offsets = [0, 0], sizes = [8, 128], strides = [1, 1]} : vector<8x384xf32> to vector<8x128xf32>
    %103 = arith.addf %101, %102 : vector<8x128xf32>
    %104 = arith.negf %103 : vector<8x128xf32>
    %105 = math.exp %104 : vector<8x128xf32>
    %cst_31 = arith.constant 1.000000e+00 : f32
    %106 = vector.broadcast %cst_31 : f32 to vector<8x128xf32>
    %107 = arith.addf %106, %105 : vector<8x128xf32>
    %108 = arith.divf %106, %107 : vector<8x128xf32>
    %109 = vector.extract_strided_slice %99 {offsets = [0, 128], sizes = [8, 128], strides = [1, 1]} : vector<8x384xf32> to vector<8x128xf32>
    %110 = vector.extract_strided_slice %100 {offsets = [0, 128], sizes = [8, 128], strides = [1, 1]} : vector<8x384xf32> to vector<8x128xf32>
    %111 = arith.addf %109, %110 : vector<8x128xf32>
    %112 = arith.negf %111 : vector<8x128xf32>
    %113 = math.exp %112 : vector<8x128xf32>
    %cst_32 = arith.constant 1.000000e+00 : f32
    %114 = vector.broadcast %cst_32 : f32 to vector<8x128xf32>
    %115 = arith.addf %114, %113 : vector<8x128xf32>
    %116 = arith.divf %114, %115 : vector<8x128xf32>
    %117 = vector.extract_strided_slice %99 {offsets = [0, 256], sizes = [8, 128], strides = [1, 1]} : vector<8x384xf32> to vector<8x128xf32>
    %118 = vector.extract_strided_slice %100 {offsets = [0, 256], sizes = [8, 128], strides = [1, 1]} : vector<8x384xf32> to vector<8x128xf32>
    %119 = arith.addf %118, %3 : vector<8x128xf32>
    %120 = arith.mulf %108, %119 : vector<8x128xf32>
    %121 = arith.addf %117, %120 : vector<8x128xf32>
    %122 = math.tanh %121 : vector<8x128xf32>
    %cst_33 = arith.constant 1.000000e+00 : f32
    %123 = vector.broadcast %cst_33 : f32 to vector<8x128xf32>
    %124 = arith.subf %123, %116 : vector<8x128xf32>
    %125 = arith.mulf %124, %122 : vector<8x128xf32>
    %126 = arith.mulf %116, %98 : vector<8x128xf32>
    %127 = arith.addf %125, %126 : vector<8x128xf32>
    %c32 = arith.constant 32 : index
    %c0_34 = arith.constant 0 : index
    %128 = vector.load %arg12[%c32, %c0_34] : memref<64x384xf32, #tpu.memory_space<vmem>>, vector<8x384xf32>
    %cst_35 = arith.constant dense<0.000000e+00> : vector<8x384xf32>
    %129 = tpu.matmul %127, %0, %cst_35 {dimension_numbers = #tpu.dot_dimension_numbers<[1], [0], [0], [1], [0, 0, 1, 1], [], []>} : vector<8x128xf32>, vector<128x384xf32>, vector<8x384xf32> -> vector<8x384xf32>
    %130 = vector.extract_strided_slice %128 {offsets = [0, 0], sizes = [8, 128], strides = [1, 1]} : vector<8x384xf32> to vector<8x128xf32>
    %131 = vector.extract_strided_slice %129 {offsets = [0, 0], sizes = [8, 128], strides = [1, 1]} : vector<8x384xf32> to vector<8x128xf32>
    %132 = arith.addf %130, %131 : vector<8x128xf32>
    %133 = arith.negf %132 : vector<8x128xf32>
    %134 = math.exp %133 : vector<8x128xf32>
    %cst_36 = arith.constant 1.000000e+00 : f32
    %135 = vector.broadcast %cst_36 : f32 to vector<8x128xf32>
    %136 = arith.addf %135, %134 : vector<8x128xf32>
    %137 = arith.divf %135, %136 : vector<8x128xf32>
    %138 = vector.extract_strided_slice %128 {offsets = [0, 128], sizes = [8, 128], strides = [1, 1]} : vector<8x384xf32> to vector<8x128xf32>
    %139 = vector.extract_strided_slice %129 {offsets = [0, 128], sizes = [8, 128], strides = [1, 1]} : vector<8x384xf32> to vector<8x128xf32>
    %140 = arith.addf %138, %139 : vector<8x128xf32>
    %141 = arith.negf %140 : vector<8x128xf32>
    %142 = math.exp %141 : vector<8x128xf32>
    %cst_37 = arith.constant 1.000000e+00 : f32
    %143 = vector.broadcast %cst_37 : f32 to vector<8x128xf32>
    %144 = arith.addf %143, %142 : vector<8x128xf32>
    %145 = arith.divf %143, %144 : vector<8x128xf32>
    %146 = vector.extract_strided_slice %128 {offsets = [0, 256], sizes = [8, 128], strides = [1, 1]} : vector<8x384xf32> to vector<8x128xf32>
    %147 = vector.extract_strided_slice %129 {offsets = [0, 256], sizes = [8, 128], strides = [1, 1]} : vector<8x384xf32> to vector<8x128xf32>
    %148 = arith.addf %147, %3 : vector<8x128xf32>
    %149 = arith.mulf %137, %148 : vector<8x128xf32>
    %150 = arith.addf %146, %149 : vector<8x128xf32>
    %151 = math.tanh %150 : vector<8x128xf32>
    %cst_38 = arith.constant 1.000000e+00 : f32
    %152 = vector.broadcast %cst_38 : f32 to vector<8x128xf32>
    %153 = arith.subf %152, %145 : vector<8x128xf32>
    %154 = arith.mulf %153, %151 : vector<8x128xf32>
    %155 = arith.mulf %145, %127 : vector<8x128xf32>
    %156 = arith.addf %154, %155 : vector<8x128xf32>
    %c40 = arith.constant 40 : index
    %c0_39 = arith.constant 0 : index
    %157 = vector.load %arg12[%c40, %c0_39] : memref<64x384xf32, #tpu.memory_space<vmem>>, vector<8x384xf32>
    %cst_40 = arith.constant dense<0.000000e+00> : vector<8x384xf32>
    %158 = tpu.matmul %156, %0, %cst_40 {dimension_numbers = #tpu.dot_dimension_numbers<[1], [0], [0], [1], [0, 0, 1, 1], [], []>} : vector<8x128xf32>, vector<128x384xf32>, vector<8x384xf32> -> vector<8x384xf32>
    %159 = vector.extract_strided_slice %157 {offsets = [0, 0], sizes = [8, 128], strides = [1, 1]} : vector<8x384xf32> to vector<8x128xf32>
    %160 = vector.extract_strided_slice %158 {offsets = [0, 0], sizes = [8, 128], strides = [1, 1]} : vector<8x384xf32> to vector<8x128xf32>
    %161 = arith.addf %159, %160 : vector<8x128xf32>
    %162 = arith.negf %161 : vector<8x128xf32>
    %163 = math.exp %162 : vector<8x128xf32>
    %cst_41 = arith.constant 1.000000e+00 : f32
    %164 = vector.broadcast %cst_41 : f32 to vector<8x128xf32>
    %165 = arith.addf %164, %163 : vector<8x128xf32>
    %166 = arith.divf %164, %165 : vector<8x128xf32>
    %167 = vector.extract_strided_slice %157 {offsets = [0, 128], sizes = [8, 128], strides = [1, 1]} : vector<8x384xf32> to vector<8x128xf32>
    %168 = vector.extract_strided_slice %158 {offsets = [0, 128], sizes = [8, 128], strides = [1, 1]} : vector<8x384xf32> to vector<8x128xf32>
    %169 = arith.addf %167, %168 : vector<8x128xf32>
    %170 = arith.negf %169 : vector<8x128xf32>
    %171 = math.exp %170 : vector<8x128xf32>
    %cst_42 = arith.constant 1.000000e+00 : f32
    %172 = vector.broadcast %cst_42 : f32 to vector<8x128xf32>
    %173 = arith.addf %172, %171 : vector<8x128xf32>
    %174 = arith.divf %172, %173 : vector<8x128xf32>
    %175 = vector.extract_strided_slice %157 {offsets = [0, 256], sizes = [8, 128], strides = [1, 1]} : vector<8x384xf32> to vector<8x128xf32>
    %176 = vector.extract_strided_slice %158 {offsets = [0, 256], sizes = [8, 128], strides = [1, 1]} : vector<8x384xf32> to vector<8x128xf32>
    %177 = arith.addf %176, %3 : vector<8x128xf32>
    %178 = arith.mulf %166, %177 : vector<8x128xf32>
    %179 = arith.addf %175, %178 : vector<8x128xf32>
    %180 = math.tanh %179 : vector<8x128xf32>
    %cst_43 = arith.constant 1.000000e+00 : f32
    %181 = vector.broadcast %cst_43 : f32 to vector<8x128xf32>
    %182 = arith.subf %181, %174 : vector<8x128xf32>
    %183 = arith.mulf %182, %180 : vector<8x128xf32>
    %184 = arith.mulf %174, %156 : vector<8x128xf32>
    %185 = arith.addf %183, %184 : vector<8x128xf32>
    %c48 = arith.constant 48 : index
    %c0_44 = arith.constant 0 : index
    %186 = vector.load %arg12[%c48, %c0_44] : memref<64x384xf32, #tpu.memory_space<vmem>>, vector<8x384xf32>
    %cst_45 = arith.constant dense<0.000000e+00> : vector<8x384xf32>
    %187 = tpu.matmul %185, %0, %cst_45 {dimension_numbers = #tpu.dot_dimension_numbers<[1], [0], [0], [1], [0, 0, 1, 1], [], []>} : vector<8x128xf32>, vector<128x384xf32>, vector<8x384xf32> -> vector<8x384xf32>
    %188 = vector.extract_strided_slice %186 {offsets = [0, 0], sizes = [8, 128], strides = [1, 1]} : vector<8x384xf32> to vector<8x128xf32>
    %189 = vector.extract_strided_slice %187 {offsets = [0, 0], sizes = [8, 128], strides = [1, 1]} : vector<8x384xf32> to vector<8x128xf32>
    %190 = arith.addf %188, %189 : vector<8x128xf32>
    %191 = arith.negf %190 : vector<8x128xf32>
    %192 = math.exp %191 : vector<8x128xf32>
    %cst_46 = arith.constant 1.000000e+00 : f32
    %193 = vector.broadcast %cst_46 : f32 to vector<8x128xf32>
    %194 = arith.addf %193, %192 : vector<8x128xf32>
    %195 = arith.divf %193, %194 : vector<8x128xf32>
    %196 = vector.extract_strided_slice %186 {offsets = [0, 128], sizes = [8, 128], strides = [1, 1]} : vector<8x384xf32> to vector<8x128xf32>
    %197 = vector.extract_strided_slice %187 {offsets = [0, 128], sizes = [8, 128], strides = [1, 1]} : vector<8x384xf32> to vector<8x128xf32>
    %198 = arith.addf %196, %197 : vector<8x128xf32>
    %199 = arith.negf %198 : vector<8x128xf32>
    %200 = math.exp %199 : vector<8x128xf32>
    %cst_47 = arith.constant 1.000000e+00 : f32
    %201 = vector.broadcast %cst_47 : f32 to vector<8x128xf32>
    %202 = arith.addf %201, %200 : vector<8x128xf32>
    %203 = arith.divf %201, %202 : vector<8x128xf32>
    %204 = vector.extract_strided_slice %186 {offsets = [0, 256], sizes = [8, 128], strides = [1, 1]} : vector<8x384xf32> to vector<8x128xf32>
    %205 = vector.extract_strided_slice %187 {offsets = [0, 256], sizes = [8, 128], strides = [1, 1]} : vector<8x384xf32> to vector<8x128xf32>
    %206 = arith.addf %205, %3 : vector<8x128xf32>
    %207 = arith.mulf %195, %206 : vector<8x128xf32>
    %208 = arith.addf %204, %207 : vector<8x128xf32>
    %209 = math.tanh %208 : vector<8x128xf32>
    %cst_48 = arith.constant 1.000000e+00 : f32
    %210 = vector.broadcast %cst_48 : f32 to vector<8x128xf32>
    %211 = arith.subf %210, %203 : vector<8x128xf32>
    %212 = arith.mulf %211, %209 : vector<8x128xf32>
    %213 = arith.mulf %203, %185 : vector<8x128xf32>
    %214 = arith.addf %212, %213 : vector<8x128xf32>
    %c56 = arith.constant 56 : index
    %c0_49 = arith.constant 0 : index
    %215 = vector.load %arg12[%c56, %c0_49] : memref<64x384xf32, #tpu.memory_space<vmem>>, vector<8x384xf32>
    %cst_50 = arith.constant dense<0.000000e+00> : vector<8x384xf32>
    %216 = tpu.matmul %214, %0, %cst_50 {dimension_numbers = #tpu.dot_dimension_numbers<[1], [0], [0], [1], [0, 0, 1, 1], [], []>} : vector<8x128xf32>, vector<128x384xf32>, vector<8x384xf32> -> vector<8x384xf32>
    %217 = vector.extract_strided_slice %215 {offsets = [0, 0], sizes = [8, 128], strides = [1, 1]} : vector<8x384xf32> to vector<8x128xf32>
    %218 = vector.extract_strided_slice %216 {offsets = [0, 0], sizes = [8, 128], strides = [1, 1]} : vector<8x384xf32> to vector<8x128xf32>
    %219 = arith.addf %217, %218 : vector<8x128xf32>
    %220 = arith.negf %219 : vector<8x128xf32>
    %221 = math.exp %220 : vector<8x128xf32>
    %cst_51 = arith.constant 1.000000e+00 : f32
    %222 = vector.broadcast %cst_51 : f32 to vector<8x128xf32>
    %223 = arith.addf %222, %221 : vector<8x128xf32>
    %224 = arith.divf %222, %223 : vector<8x128xf32>
    %225 = vector.extract_strided_slice %215 {offsets = [0, 128], sizes = [8, 128], strides = [1, 1]} : vector<8x384xf32> to vector<8x128xf32>
    %226 = vector.extract_strided_slice %216 {offsets = [0, 128], sizes = [8, 128], strides = [1, 1]} : vector<8x384xf32> to vector<8x128xf32>
    %227 = arith.addf %225, %226 : vector<8x128xf32>
    %228 = arith.negf %227 : vector<8x128xf32>
    %229 = math.exp %228 : vector<8x128xf32>
    %cst_52 = arith.constant 1.000000e+00 : f32
    %230 = vector.broadcast %cst_52 : f32 to vector<8x128xf32>
    %231 = arith.addf %230, %229 : vector<8x128xf32>
    %232 = arith.divf %230, %231 : vector<8x128xf32>
    %233 = vector.extract_strided_slice %215 {offsets = [0, 256], sizes = [8, 128], strides = [1, 1]} : vector<8x384xf32> to vector<8x128xf32>
    %234 = vector.extract_strided_slice %216 {offsets = [0, 256], sizes = [8, 128], strides = [1, 1]} : vector<8x384xf32> to vector<8x128xf32>
    %235 = arith.addf %234, %3 : vector<8x128xf32>
    %236 = arith.mulf %224, %235 : vector<8x128xf32>
    %237 = arith.addf %233, %236 : vector<8x128xf32>
    %238 = math.tanh %237 : vector<8x128xf32>
    %cst_53 = arith.constant 1.000000e+00 : f32
    %239 = vector.broadcast %cst_53 : f32 to vector<8x128xf32>
    %240 = arith.subf %239, %232 : vector<8x128xf32>
    %241 = arith.mulf %240, %238 : vector<8x128xf32>
    %242 = arith.mulf %232, %214 : vector<8x128xf32>
    %243 = arith.addf %241, %242 : vector<8x128xf32>
    %c0_54 = arith.constant 0 : index
    %c0_55 = arith.constant 0 : index
    %244 = vector.load %arg6[%c0_54, %c0_55] : memref<128x128xf32, #tpu.memory_space<vmem>>, vector<128x128xf32>
    %cst_56 = arith.constant dense<0.000000e+00> : vector<8x128xf32>
    %245 = tpu.matmul %243, %244, %cst_56 {dimension_numbers = #tpu.dot_dimension_numbers<[1], [0], [0], [1], [0, 0, 1, 1], [], []>} : vector<8x128xf32>, vector<128x128xf32>, vector<8x128xf32> -> vector<8x128xf32>
    %c0_57 = arith.constant 0 : index
    %c0_58 = arith.constant 0 : index
    %246 = vector.load %arg7[%c0_57, %c0_58] : memref<1x128xf32, #tpu.memory_space<vmem>>, vector<1x128xf32>
    %247 = vector.broadcast %246 : vector<1x128xf32> to vector<8x128xf32>
    %248 = arith.addf %245, %247 : vector<8x128xf32>
    %cst_59 = arith.constant 0.000000e+00 : f32
    %249 = vector.broadcast %cst_59 : f32 to vector<8x128xf32>
    %250 = arith.maximumf %248, %249 : vector<8x128xf32>
    %c0_60 = arith.constant 0 : index
    %c0_61 = arith.constant 0 : index
    %251 = vector.load %arg8[%c0_60, %c0_61] : memref<128x128xf32, #tpu.memory_space<vmem>>, vector<128x128xf32>
    %cst_62 = arith.constant dense<0.000000e+00> : vector<8x128xf32>
    %252 = tpu.matmul %250, %251, %cst_62 {dimension_numbers = #tpu.dot_dimension_numbers<[1], [0], [0], [1], [0, 0, 1, 1], [], []>} : vector<8x128xf32>, vector<128x128xf32>, vector<8x128xf32> -> vector<8x128xf32>
    %c0_63 = arith.constant 0 : index
    %c0_64 = arith.constant 0 : index
    %253 = vector.load %arg9[%c0_63, %c0_64] : memref<1x128xf32, #tpu.memory_space<vmem>>, vector<1x128xf32>
    %254 = vector.broadcast %253 : vector<1x128xf32> to vector<8x128xf32>
    %255 = arith.addf %252, %254 : vector<8x128xf32>
    %c0_65 = arith.constant 0 : index
    %c0_66 = arith.constant 0 : index
    %256 = vector.load %arg10[%c0_65, %c0_66] : memref<8x128xf32, #tpu.memory_space<vmem>>, vector<8x128xf32>
    tpu.vector_store %arg10[%c0_65, %c0_66], %255 {strides = array<i32>} : memref<8x128xf32, #tpu.memory_space<vmem>>, vector<8x128xf32>,
    %c0_67 = arith.constant 0 : index
    %c0_68 = arith.constant 0 : index
    %257 = vector.load %arg11[%c0_67, %c0_68] : memref<8x128xf32, #tpu.memory_space<vmem>>, vector<8x128xf32>
    tpu.vector_store %arg11[%c0_67, %c0_68], %243 {strides = array<i32>} : memref<8x128xf32, #tpu.memory_space<vmem>>, vector<8x128xf32>,
    return
  }
}

</mosaic_0001>

<bundles_post_ra>
// kernel: _ddrqn_forward_impl.1
= control target key start
LH: loop header
LB: loop body
LE: loop exit
PB: predicated region body
PF: predicated region fallthrough
CT: control target
= control target key end

     0   :  { %17 = vsyncpa [#allocation4], 0  ;;  %s2439_s0 = inlined_call_operand.vmem [shape: f32[64,16], index: 0, kind: input, shape index: {}]   ;;  %s2440_s1 = inlined_call_operand.vmem [shape: f32[8,128], index: 1, kind: input, shape index: {}]   ;;  %s2441_s2 = inlined_call_operand.vmem [shape: f32[16,384], index: 2, kind: input, shape index: {}]   ;;  %s2442_s3 = inlined_call_operand.hbm [shape: f32[128,384], index: 3, kind: input, shape index: {}]   ;;  %s2443_s4 = inlined_call_operand.vmem [shape: f32[1,384], index: 4, kind: input, shape index: {}]   ;;  %s2444_s5 = inlined_call_operand.vmem [shape: f32[1,128], index: 5, kind: input, shape index: {}]   ;;  %s2445_s6 = inlined_call_operand.hbm [shape: f32[128,128], index: 6, kind: input, shape index: {}]   ;;  %s2446_s7 = inlined_call_operand.vmem [shape: f32[1,128], index: 7, kind: input, shape index: {}]   ;;  %s2447_s8 = inlined_call_operand.hbm [shape: f32[128,128], index: 8, kind: input, shape index: {}]   ;;  %s2448_s9 = inlined_call_operand.vmem [shape: f32[1,128], index: 9, kind: input, shape index: {}]   ;;  %s2449_s10 = inlined_call_operand.vmem [shape: f32[8,128], index: 10, kind: output, shape index: {0}]   ;;  %s2450_s11 = inlined_call_operand.vmem [shape: f32[8,128], index: 11, kind: output, shape index: {1}]  }
   0x1   :  { %18 = vsyncpa [#allocation6], 0  ;;  %s46_s19 = sshll.u32 %s2445_s6, 4  ;;  %s1567_s20 = smov [#allocation5]   ;;  %s47_s19 = int_to_ptr.hbm [resolvable:$true] %s46_s19 }
   0x2   :  { %s48_s21 = sshll.u32 %s1567_s20, 4  ;;  %s29_s24 = sshll.u32 %s2442_s3, 4  ;;  %s49_s21 = int_to_ptr.vmem [resolvable:$true] %s48_s21  ;;  %s30_s24 = int_to_ptr.hbm [resolvable:$true] %s29_s24 }
   0x3   :  { %s1568_s25 = smov 128   ;;  %s1569_s26 = smov 8  }
   0x4   :  { %54 = dma.hbm_to_vmem [thread:$0]  %s47_s19, 2048, %s49_s21, [#allocation6], %s1568_s25, %s1568_s25, %s1569_s26  }
   0x5   :  { %s1570_s27 = smov [#allocation3]   ;;  %s1571_s29 = smov 384  }
   0x6   :  { %s31_s28 = sshll.u32 %s1570_s27, 4  ;;  %s1572_s30 = smov 24   ;;  %s32_s28 = int_to_ptr.vmem [resolvable:$true] %s31_s28 }
   0x7   :  { %37 = dma.hbm_to_vmem [thread:$0]  %s30_s24, 6144, %s32_s28, [#allocation4], %s1571_s29, %s1571_s29, %s1572_s30  }
   0x8   :  { %s61_s13 = sshll.u32 %s2447_s8, 4  ;;  %s1573_s14 = smov [#allocation7]   ;;  %s62_s13 = int_to_ptr.hbm [resolvable:$true] %s61_s13 }
   0x9   :  { %s63_s15 = sshll.u32 %s1573_s14, 4  ;;  %s64_s15 = int_to_ptr.vmem [resolvable:$true] %s63_s15 }
   0xa   :  { %69 = dma.hbm_to_vmem [thread:$0]  %s62_s13, 2048, %s64_s15, [#allocation6], %s1568_s25, %s1568_s25, %s1569_s26  }
   0xb   :  { %1563 = dma.done.wait [#allocation4], 6144  }
   0xc   :  { %1564 = vsyncadd [#allocation4], 4294961152 }
   0xd   :  { %1565 = dma.done.wait [#allocation6], 4096  }
   0xe   :  { %1566 = vsyncadd [#allocation6], 4294963200  ;;  %v147_v0 = vld [vmem:[%s2441_s2 + $0x18] sm:$0xff]  ;;  %v1646_v1 = vld [vmem:[#allocation3 + $0x168] sm:$0xff]  ;;  %vm158_vm0 = vcmask 130048  }
   0xf   :  { %v144_v2 = vld [vmem:[%s2441_s2] sm:$0xff]  ;;  %197 = vmatpush.msra.mxu0 %v147_v0  ;;  %334 = vmatpush.msra.mxu3 %v1646_v1  ;;  %v1652_v3 = vld [vmem:[#allocation3 + $0x150] sm:$0xff]  ;;  %v1659_v5 = vld [vmem:[#allocation3 + $0x138] sm:$0xff] }
  0x10   :  { %v1657_v4 = vld [vmem:[%s2439_s0] sm:$0xff]  ;;  %v1667_v7 = vld [vmem:[#allocation3 + $0x178] sm:$0xff]  ;;  %v1669_v8 = vld [vmem:[#allocation3 + $0x108] sm:$0xff] }
  0x11   :  { %198 = vmatpush.msra.mxu0 %v144_v2  ;;  %335 = vmatpush.msra.mxu3 %v1652_v3  ;;  %v1664_v6 = vld [vmem:[#allocation3 + $0x120] sm:$0xff]  ;;  %v1675_v10 = vld [vmem:[#allocation3 + $0xf0] sm:$0xff]  ;;  %v1678_v11 = vld [vmem:[#allocation3 + $0x148] sm:$0xff] }
  0x12   :  { %1312 = vmatmul.msk.f32.vlgmr.msra.gmra.mxu0 %vm158_vm0, %v1657_v4  ;;  %v1673_v9 = vld [vmem:[#allocation3 + $0x160] sm:$0xff]  ;;  %v1684_v12 = vld [vmem:[%s2439_s0 + $0x8] sm:$0xff]  ;;  %v1686_v13 = vld [vmem:[#allocation3 + $0xd8] sm:$0xff] }
  0x13   :  { %336 = vmatpush.msra.mxu3 %v1659_v5  ;;  %374 = vmatpush.msrb.mxu0 %v1667_v7  ;;  %v1689_v14 = vld [vmem:[#allocation3 + $0x130] sm:$0xff]  ;;  %v1692_v15 = vld [vmem:[#allocation3 + $0xc0] sm:$0xff]  ;;  %v1696_v16 = vld [vmem:[#allocation3 + $0x118] sm:$0xff] }
  0x14   :  { %v1700_v17 = vld [vmem:[#allocation3 + $0xa8] sm:$0xff]  ;;  %v1702_v18 = vld [vmem:[#allocation3 + $0x100] sm:$0xff]  ;;  %v1706_v19 = vld [vmem:[#allocation3 + $0x90] sm:$0xff] }
  0x15   :  { %337 = vmatpush.msra.mxu3 %v1664_v6  ;;  %375 = vmatpush.msrb.mxu0 %v1673_v9  ;;  %v1712_v20 = vld [vmem:[%s2439_s0 + $0x10] sm:$0xff]  ;;  %v1715_v21 = vld [vmem:[#allocation3 + $0xe8] sm:$0xff]  ;;  %v1717_v22 = vld [vmem:[#allocation3 + $0x78] sm:$0xff] }
  0x16   :  { %v1721_v23 = vld [vmem:[#allocation3 + $0xd0] sm:$0xff]  ;;  %v1725_v24 = vld [vmem:[#allocation3 + $0x60] sm:$0xff]  ;;  %v1729_v25 = vld [vmem:[#allocation3 + $0xb8] sm:$0xff] }
  0x17   :  { %338 = vmatpush.msra.mxu3 %v1669_v8  ;;  %376 = vmatpush.msrb.mxu0 %v1678_v11  ;;  %v1731_v26 = vld [vmem:[#allocation3 + $0x48] sm:$0xff]  ;;  %v1735_v27 = vld [vmem:[#allocation3 + $0xa0] sm:$0xff]  ;;  %v1737_v28 = vld [vmem:[#allocation3 + $0x30] sm:$0xff] }
  0x18   :  { %2471 = vst [vmem:[#allocation10_spill] sm:$0xff] %v1737_v28  ;;  %v1743_v29 = vld [vmem:[%s2439_s0 + $0x18] sm:$0xff]  ;;  %v1746_v30 = vld [vmem:[#allocation3 + $0x88] sm:$0xff]  ;;  %v1752_v32 = vld [vmem:[#allocation3 + $0x70] sm:$0xff] }
  0x19   :  { %339 = vmatpush.msra.mxu3 %v1675_v10  ;;  %377 = vmatpush.msrb.mxu0 %v1689_v14  ;;  %v1748_v31 = vld [vmem:[#allocation3 + $0x18] sm:$0xff]  ;;  %v1756_v33 = vld [vmem:[#allocation3] sm:$0xff]  ;;  %v149_v35 = vld [vmem:[%s2441_s2 + $0x28] sm:$0xff] }
  0x1a   :  { %1313 = vmatmul.msk.f32.gmra.mxu0 %vm158_vm0, %v1684_v12  ;;  %2472 = vst [vmem:[#allocation11_spill] sm:$0xff] %v1748_v31  ;;  %v1762_v34 = vld [vmem:[%s2440_s1] sm:$0xff]  ;;  %v1768_v36 = vld [vmem:[#allocation3 + $0x58] sm:$0xff]  ;;  %v1770_v37 = vld [vmem:[#allocation3 + $0x170] sm:$0xff]  ;;  %279 = vmatpush.msra.mxu2 %v149_v35 }
  0x1b   :  { %340 = vmatpush.msra.mxu3 %v1686_v13  ;;  %378 = vmatpush.msrb.mxu0 %v1696_v16  ;;  %2473 = vst [vmem:[#allocation12_spill] sm:$0xff] %v1756_v33  ;;  %v146_v38 = vld [vmem:[%s2441_s2 + $0x10] sm:$0xff]  ;;  %v1777_v39 = vld [vmem:[#allocation3 + $0x40] sm:$0xff]  ;;  %v1780_v40 = vld [vmem:[#allocation3 + $0x158] sm:$0xff] }
  0x1c   :  { %2474 = vst [vmem:[#allocation13_spill] sm:$0xff] %v1777_v39  ;;  %280 = vmatpush.msra.mxu2 %v146_v38  ;;  %v148_v41 = vld [vmem:[%s2441_s2 + $0x20] sm:$0xff]  ;;  %v1785_v42 = vld [vmem:[#allocation3 + $0x28] sm:$0xff]  ;;  %v1803_v46 = vld [vmem:[#allocation3 + $0x10] sm:$0xff] }
  0x1d   :  { %341 = vmatpush.msra.mxu3 %v1692_v15  ;;  %379 = vmatpush.msrb.mxu0 %v1702_v18  ;;  %2475 = vst [vmem:[#allocation14_spill] sm:$0xff] %v1785_v42  ;;  %v1791_v43 = vld [vmem:[%s2439_s0 + $0x20] sm:$0xff]  ;;  %v145_v44 = vld [vmem:[%s2441_s2 + $0x8] sm:$0xff]  ;;  %v1812_v48 = vld [vmem:[#allocation3 + $0x110] sm:$0xff] }
  0x1e   :  { %v1797_v45 = vld [vmem:[#allocation3 + $0x140] sm:$0xff]  ;;  %238 = vmatpush.msra.mxu1 %v148_v41  ;;  %1328 = vmatmul.msk.f32.vlgmr.msra.gmra.mxu2 %vm158_vm0, %v1657_v4  ;;  %2476 = vst [vmem:[#allocation15_spill] sm:$0xff] %v1803_v46  ;;  %v1807_v47 = vld [vmem:[#allocation3 + $0x128] sm:$0xff]  ;;  %v1818_v49 = vld [vmem:[#allocation3 + $0xf8] sm:$0xff] }
  0x1f   :  { %342 = vmatpush.msra.mxu3 %v1700_v17  ;;  %380 = vmatpush.msrb.mxu0 %v1715_v21  ;;  %v1826_v50 = vld [vmem:[%s2439_s0 + $0x28] sm:$0xff]  ;;  %v1829_v51 = vld [vmem:[#allocation3 + $0xe0] sm:$0xff]  ;;  %v1844_v53 = vld [vmem:[#allocation3 + $0xb0] sm:$0xff] }
  0x20   :  { %239 = vmatpush.msra.mxu1 %v145_v44  ;;  %465 = vmatpush.msrb.mxu2 %v1770_v37  ;;  %v1838_v52 = vld [vmem:[#allocation3 + $0xc8] sm:$0xff]  ;;  %v1850_v54 = vld [vmem:[#allocation3 + $0x98] sm:$0xff]  ;;  %v1858_v55 = vld [vmem:[%s2439_s0 + $0x30] sm:$0xff] }
  0x21   :  { %343 = vmatpush.msra.mxu3 %v1706_v19  ;;  %381 = vmatpush.msrb.mxu0 %v1721_v23  ;;  %v1861_v56 = vld [vmem:[#allocation3 + $0x80] sm:$0xff]  ;;  %v1870_v57 = vld [vmem:[#allocation3 + $0x68] sm:$0xff]  ;;  %v1876_v58 = vld [vmem:[#allocation3 + $0x50] sm:$0xff] }
  0x22   :  { %1314 = vmatmul.msk.f32.gmra.mxu0 %vm158_vm0, %v1712_v20  ;;  %1320 = vmatmul.msk.f32.vlgmr.msra.gmra.mxu1 %vm158_vm0, %v1657_v4  ;;  %2477 = vst [vmem:[#allocation16_spill] sm:$0xff] %v1876_v58  ;;  %v1882_v59 = vld [vmem:[#allocation3 + $0x38] sm:$0xff]  ;;  %v1893_v61 = vld [vmem:[#allocation3 + $0x20] sm:$0xff]  ;;  %v1902_v62 = vld [vmem:[#allocation3 + $0x8] sm:$0xff] }
  0x23   :  { %344 = vmatpush.msra.mxu3 %v1717_v22  ;;  %382 = vmatpush.msrb.mxu0 %v1729_v25  ;;  %2478 = vst [vmem:[#allocation17_spill] sm:$0xff] %v1882_v59  ;;  %v1890_v60 = vld [vmem:[%s2439_s0 + $0x38] sm:$0xff]  ;;  %v150_v0 = vld [vmem:[%s2443_s4] sm:$0x7] }
  0x24   :  { %445 = vmatpush.msrb.mxu1 %v1646_v1  ;;  %466 = vmatpush.msrb.mxu2 %v1780_v40  ;;  %2479 = vst [vmem:[#allocation18_spill] sm:$0xff] %v1893_v61  ;;  %v152_v2 = vperm.slane %v150_v0, 0 }
  0x25   :  { %345 = vmatpush.msra.mxu3 %v1725_v24  ;;  %383 = vmatpush.msrb.mxu0 %v1735_v27  ;;  %2480 = vst [vmem:[#allocation19_spill] sm:$0xff] %v1902_v62 }
  0x26   :  { %446 = vmatpush.msrb.mxu1 %v1652_v3  ;;  %1329 = vmatmul.msk.f32.gmra.mxu2 %vm158_vm0, %v1684_v12 }
  0x27   :  { %346 = vmatpush.msra.mxu3 %v1731_v26  ;;  %384 = vmatpush.msrb.mxu0 %v1746_v30 }
  0x28   :  { %447 = vmatpush.msrb.mxu1 %v1659_v5  ;;  %467 = vmatpush.msrb.mxu2 %v1797_v45 }
  0x29   :  { %347 = vmatpush.msra.mxu3 %v1737_v28  ;;  %385 = vmatpush.msrb.mxu0 %v1752_v32 }
  0x2a   :  { %1315 = vmatmul.msk.f32.gmra.mxu0 %vm158_vm0, %v1743_v29  ;;  %448 = vmatpush.msrb.mxu1 %v1664_v6 }
  0x2b   :  { %348 = vmatpush.msra.mxu3 %v1748_v31  ;;  %386 = vmatpush.msrb.mxu0 %v1768_v36 }
  0x2c   :  { %1321 = vmatmul.msk.f32.gmra.mxu1 %vm158_vm0, %v1684_v12  ;;  %468 = vmatpush.msrb.mxu2 %v1807_v47 }
  0x2d   :  { %349 = vmatpush.msra.mxu3 %v1756_v33  ;;  %387 = vmatpush.msrb.mxu0 %v1777_v39 }
  0x2e   :  { %350 = vmatmul.f32.vlgmr.msra.gmra.mxu3 %v1762_v34  ;;  %449 = vmatpush.msrb.mxu1 %v1669_v8 }
  0x2f   :  { %354 = vmatpush.msrb.mxu3 %v1770_v37  ;;  %388 = vmatpush.msrb.mxu0 %v1785_v42 }
  0x30   :  { %469 = vmatpush.msrb.mxu2 %v1812_v48  ;;  %450 = vmatpush.msrb.mxu1 %v1675_v10 }
  0x31   :  { %355 = vmatpush.msrb.mxu3 %v1780_v40  ;;  %389 = vmatpush.msrb.mxu0 %v1803_v46 }
  0x32   :  { %1316 = vmatmul.msk.f32.gmra.mxu0 %vm158_vm0, %v1791_v43  ;;  %1330 = vmatmul.msk.f32.gmra.mxu2 %vm158_vm0, %v1712_v20 }
  0x33   :  { %356 = vmatpush.msrb.mxu3 %v1797_v45  ;;  %556 = vmatpush.msra.mxu0 %v1646_v1 }
  0x34   :  { %451 = vmatpush.msrb.mxu1 %v1686_v13  ;;  %470 = vmatpush.msrb.mxu2 %v1818_v49 }
  0x35   :  { %357 = vmatpush.msrb.mxu3 %v1807_v47  ;;  %557 = vmatpush.msra.mxu0 %v1652_v3 }
  0x36   :  { %452 = vmatpush.msrb.mxu1 %v1692_v15  ;;  %471 = vmatpush.msrb.mxu2 %v1829_v51 }
  0x37   :  { %358 = vmatpush.msrb.mxu3 %v1812_v48  ;;  %558 = vmatpush.msra.mxu0 %v1659_v5 }
  0x38   :  { %1322 = vmatmul.msk.f32.gmra.mxu1 %vm158_vm0, %v1712_v20  ;;  %472 = vmatpush.msrb.mxu2 %v1838_v52 }
  0x39   :  { %359 = vmatpush.msrb.mxu3 %v1818_v49  ;;  %453 = vmatpush.msrb.mxu1 %v1700_v17 }
  0x3a   :  { %1317 = vmatmul.msk.f32.gmra.mxu0 %vm158_vm0, %v1826_v50  ;;  %1331 = vmatmul.msk.f32.gmra.mxu2 %vm158_vm0, %v1743_v29 }
  0x3b   :  { %360 = vmatpush.msrb.mxu3 %v1829_v51  ;;  %559 = vmatpush.msra.mxu0 %v1664_v6 }
  0x3c   :  { %454 = vmatpush.msrb.mxu1 %v1706_v19  ;;  %473 = vmatpush.msrb.mxu2 %v1844_v53 }
  0x3d   :  { %361 = vmatpush.msrb.mxu3 %v1838_v52  ;;  %560 = vmatpush.msra.mxu0 %v1669_v8 }
  0x3e   :  { %455 = vmatpush.msrb.mxu1 %v1717_v22  ;;  %474 = vmatpush.msrb.mxu2 %v1850_v54 }
  0x3f   :  { %362 = vmatpush.msrb.mxu3 %v1844_v53  ;;  %561 = vmatpush.msra.mxu0 %v1675_v10 }
  0x40   :  { %456 = vmatpush.msrb.mxu1 %v1725_v24  ;;  %475 = vmatpush.msrb.mxu2 %v1861_v56 }
  0x41   :  { %363 = vmatpush.msrb.mxu3 %v1850_v54  ;;  %1323 = vmatmul.msk.f32.gmra.mxu1 %vm158_vm0, %v1743_v29 }
  0x42   :  { %1318 = vmatmul.msk.f32.gmra.mxu0 %vm158_vm0, %v1858_v55  ;;  %457 = vmatpush.msrb.mxu1 %v1731_v26 }
  0x43   :  { %364 = vmatpush.msrb.mxu3 %v1861_v56  ;;  %1332 = vmatmul.msk.f32.gmra.mxu2 %vm158_vm0, %v1791_v43 }
  0x44   :  { %458 = vmatpush.msrb.mxu1 %v1737_v28  ;;  %562 = vmatpush.msra.mxu0 %v1686_v13 }
  0x45   :  { %365 = vmatpush.msrb.mxu3 %v1870_v57  ;;  %476 = vmatpush.msrb.mxu2 %v1870_v57 }
  0x46   :  { %459 = vmatpush.msrb.mxu1 %v1748_v31  ;;  %563 = vmatpush.msra.mxu0 %v1692_v15 }
  0x47   :  { %366 = vmatpush.msrb.mxu3 %v1876_v58  ;;  %477 = vmatpush.msrb.mxu2 %v1876_v58 }
  0x48   :  { %460 = vmatpush.msrb.mxu1 %v1756_v33  ;;  %564 = vmatpush.msra.mxu0 %v1700_v17 }
  0x49   :  { %367 = vmatpush.msrb.mxu3 %v1882_v59  ;;  %1324 = vmatmul.msk.f32.gmra.mxu1 %vm158_vm0, %v1791_v43 }
  0x4a   :  { %1319 = vmatmul.msk.f32.gmra.mxu0 %vm158_vm0, %v1890_v60  ;;  %576 = vmatpush.msra.mxu1 %v1770_v37 }
  0x4b   :  { %368 = vmatpush.msrb.mxu3 %v1893_v61  ;;  %478 = vmatpush.msrb.mxu2 %v1882_v59 }
  0x4c   :  { %577 = vmatpush.msra.mxu1 %v1780_v40  ;;  %1333 = vmatmul.msk.f32.gmra.mxu2 %vm158_vm0, %v1826_v50 }
  0x4d   :  { %369 = vmatpush.msrb.mxu3 %v1902_v62  ;;  %479 = vmatpush.msrb.mxu2 %v1893_v61 }
  0x4e   :  { %370 = vmatmul.f32.vlgmr.msrb.gmra.mxu3 %v1762_v34  ;;  %578 = vmatpush.msra.mxu1 %v1797_v45 }
  0x4f   :  { %485 = vmatpush.msra.mxu3 %v1667_v7  ;;  %565 = vmatpush.msra.mxu0 %v1706_v19 }
  0x50   :  { %480 = vmatpush.msrb.mxu2 %v1902_v62  ;;  %579 = vmatpush.msra.mxu1 %v1807_v47 }
  0x51   :  { %486 = vmatpush.msra.mxu3 %v1673_v9  ;;  %1325 = vmatmul.msk.f32.gmra.mxu1 %vm158_vm0, %v1826_v50 }
  0x52   :  { %390 = vmatmul.f32.vlgmr.msrb.gmra.mxu0 %v1762_v34  ;;  %596 = vmatpush.msra.mxu2 %v1667_v7 }
  0x53   :  { %487 = vmatpush.msra.mxu3 %v1678_v11  ;;  %580 = vmatpush.msra.mxu1 %v1812_v48 }
  0x54   :  { %566 = vmatpush.msra.mxu0 %v1717_v22  ;;  %597 = vmatpush.msra.mxu2 %v1673_v9 }
  0x55   :  { %488 = vmatpush.msra.mxu3 %v1689_v14  ;;  %1334 = vmatmul.msk.f32.gmra.mxu2 %vm158_vm0, %v1858_v55 }
  0x56   :  { %581 = vmatpush.msra.mxu1 %v1818_v49  ;;  %598 = vmatpush.msra.mxu2 %v1678_v11 }
  0x57   :  { %489 = vmatpush.msra.mxu3 %v1696_v16  ;;  %567 = vmatpush.msra.mxu0 %v1725_v24 }
  0x58   :  { %582 = vmatpush.msra.mxu1 %v1829_v51  ;;  %599 = vmatpush.msra.mxu2 %v1689_v14 }
  0x59   :  { %490 = vmatpush.msra.mxu3 %v1702_v18  ;;  %1326 = vmatmul.msk.f32.gmra.mxu1 %vm158_vm0, %v1858_v55 }
  0x5a   :  { %583 = vmatpush.msra.mxu1 %v1838_v52  ;;  %568 = vmatpush.msra.mxu0 %v1731_v26 }
  0x5b   :  { %491 = vmatpush.msra.mxu3 %v1715_v21  ;;  %600 = vmatpush.msra.mxu2 %v1696_v16 }
  0x5c   :  { %584 = vmatpush.msra.mxu1 %v1844_v53  ;;  %569 = vmatpush.msra.mxu0 %v1737_v28 }
  0x5d   :  { %492 = vmatpush.msra.mxu3 %v1721_v23  ;;  %1335 = vmatmul.msk.f32.gmra.mxu2 %vm158_vm0, %v1890_v60 }
  0x5e   :  { %585 = vmatpush.msra.mxu1 %v1850_v54  ;;  %601 = vmatpush.msra.mxu2 %v1702_v18 }
  0x5f   :  { %493 = vmatpush.msra.mxu3 %v1729_v25  ;;  %570 = vmatpush.msra.mxu0 %v1748_v31 }
  0x60   :  { %586 = vmatpush.msra.mxu1 %v1861_v56  ;;  %602 = vmatpush.msra.mxu2 %v1715_v21 }
  0x61   :  { %494 = vmatpush.msra.mxu3 %v1735_v27  ;;  %1327 = vmatmul.msk.f32.gmra.mxu1 %vm158_vm0, %v1890_v60 }
  0x62   :  { %587 = vmatpush.msra.mxu1 %v1870_v57  ;;  %571 = vmatpush.msra.mxu0 %v1756_v33 }
  0x63   :  { %495 = vmatpush.msra.mxu3 %v1746_v30  ;;  %603 = vmatpush.msra.mxu2 %v1721_v23 }
  0x64   :  { %588 = vmatpush.msra.mxu1 %v1876_v58  ;;  %687 = vmatpush.msrb.mxu0 %v1770_v37 }
  0x65   :  { %496 = vmatpush.msra.mxu3 %v1752_v32  ;;  %604 = vmatpush.msra.mxu2 %v1729_v25 }
  0x66   :  { %589 = vmatpush.msra.mxu1 %v1882_v59  ;;  %688 = vmatpush.msrb.mxu0 %v1780_v40 }
  0x67   :  { %497 = vmatpush.msra.mxu3 %v1768_v36  ;;  %605 = vmatpush.msra.mxu2 %v1735_v27 }
  0x68   :  { %590 = vmatpush.msra.mxu1 %v1893_v61  ;;  %689 = vmatpush.msrb.mxu0 %v1797_v45 }
  0x69   :  { %498 = vmatpush.msra.mxu3 %v1777_v39  ;;  %606 = vmatpush.msra.mxu2 %v1746_v30 }
  0x6a   :  { %591 = vmatpush.msra.mxu1 %v1902_v62  ;;  %690 = vmatpush.msrb.mxu0 %v1807_v47 }
  0x6b   :  { %499 = vmatpush.msra.mxu3 %v1785_v42  ;;  %607 = vmatpush.msra.mxu2 %v1752_v32 }
  0x6c   :  { %691 = vmatpush.msrb.mxu0 %v1812_v48 }
  0x6d   :  { %500 = vmatpush.msra.mxu3 %v1803_v46  ;;  %608 = vmatpush.msra.mxu2 %v1768_v36 }
  0x6e   :  { %692 = vmatpush.msrb.mxu0 %v1818_v49 }
  0x6f   :  { %667 = vmatpush.msrb.mxu3 %v1646_v1  ;;  %609 = vmatpush.msra.mxu2 %v1777_v39 }
  0x70   :  { %693 = vmatpush.msrb.mxu0 %v1829_v51 }
  0x71   :  { %668 = vmatpush.msrb.mxu3 %v1652_v3  ;;  %610 = vmatpush.msra.mxu2 %v1785_v42 }
  0x72   :  { %694 = vmatpush.msrb.mxu0 %v1838_v52 }
  0x73   :  { %669 = vmatpush.msrb.mxu3 %v1659_v5  ;;  %611 = vmatpush.msra.mxu2 %v1803_v46 }
  0x74   :  { %695 = vmatpush.msrb.mxu0 %v1844_v53 }
  0x75   :  { %670 = vmatpush.msrb.mxu3 %v1664_v6 }
  0x76   :  { %696 = vmatpush.msrb.mxu0 %v1850_v54 }
  0x77   :  { %671 = vmatpush.msrb.mxu3 %v1669_v8 }
  0x78   :  { %697 = vmatpush.msrb.mxu0 %v1861_v56 }
  0x79   :  { %672 = vmatpush.msrb.mxu3 %v1675_v10 }
  0x7a   :  { %698 = vmatpush.msrb.mxu0 %v1870_v57 }
  0x7b   :  { %673 = vmatpush.msrb.mxu3 %v1686_v13 }
  0x7c   :  { %699 = vmatpush.msrb.mxu0 %v1876_v58 }
  0x7d   :  { %674 = vmatpush.msrb.mxu3 %v1692_v15 }
  0x7e   :  { %700 = vmatpush.msrb.mxu0 %v1882_v59 }
  0x7f   :  { %675 = vmatpush.msrb.mxu3 %v1700_v17 }
  0x80   :  { %701 = vmatpush.msrb.mxu0 %v1893_v61 }
  0x81   :  { %676 = vmatpush.msrb.mxu3 %v1706_v19 }
  0x82   :  { %702 = vmatpush.msrb.mxu0 %v1902_v62 }
  0x83   :  { %677 = vmatpush.msrb.mxu3 %v1717_v22 }
  0x85   :  { %678 = vmatpush.msrb.mxu3 %v1725_v24 }
  0x87   :  { %679 = vmatpush.msrb.mxu3 %v1731_v26 }
  0x89   :  { %680 = vmatpush.msrb.mxu3 %v1737_v28 }
  0x8b   :  { %681 = vmatpush.msrb.mxu3 %v1748_v31 }
  0x8d   :  { %682 = vmatpush.msrb.mxu3 %v1756_v33 }
  0x8f   :  { %v200_v63 = vpop.f32.mrf.mxu0 }
  0x90   :  { %v201_v43 = vadd.f32 %v200_v63, %v152_v2 }
  0x97   :  { %v203_v4 = vpop.f32.mrf.mxu0 }
  0x98   :  { %v2032_v12 = vadd.f32 %v203_v4, %v152_v2 }
  0x9a   :  { %2481 = vst [vmem:[#allocation20_spill] sm:$0xff] %v2032_v12 }
  0x9f   :  { %v206_v20 = vpop.f32.mrf.mxu0  ;;  %v241_v63 = vpop.f32.mrf.mxu1 }
  0xa0   :  { %v2034_v29 = vadd.f32 %v206_v20, %v152_v2 }
  0xa2   :  { %2482 = vst [vmem:[#allocation21_spill] sm:$0xff] %v2034_v29 }
  0xa7   :  { %v209_v35 = vpop.f32.mrf.mxu0 }
  0xa8   :  { %v2036_v38 = vadd.f32 %v209_v35, %v152_v2 }
  0xaa   :  { %2483 = vst [vmem:[#allocation22_spill] sm:$0xff] %v2036_v38  ;;  %v2046_v38 = vperm.slane %v150_v0, 1 }
  0xac   :  { %2488 = vst [vmem:[#allocation27_spill] sm:$0xff] %v2046_v38 }
  0xaf   :  { %v212_v41 = vpop.f32.mrf.mxu0 }
  0xb0   :  { %v2038_v44 = vadd.f32 %v212_v41, %v152_v2 }
  0xb1   :  { %v351_v50 = vpop.f32.mrf.mxu3 }
  0xb2   :  { %2484 = vst [vmem:[#allocation23_spill] sm:$0xff] %v2038_v44  ;;  %v394_v55 = vadd.f32 %v351_v50, %v201_v43  ;;  %v242_v43 = vadd.f32 %v241_v63, %v2046_v38 }
  0xb4   :  { %v1336_v60 = vmul.f32 -1.442695, %v394_v55 }
  0xb6   :  { %1362 = vpow2.f32 %v1336_v60 }
  0xb7   :  { %v215_v62 = vpop.f32.mrf.mxu0 }
  0xb8   :  { %v2040_v33 = vadd.f32 %v215_v62, %v152_v2 }
  0xba   :  { %2485 = vst [vmem:[#allocation24_spill] sm:$0xff] %v2040_v33 }
  0xbc   :  { %v1363_v46 = vpop.eup %1362 }
  0xbd   :  { %v398_v20 = vadd.f32 1.0, %v1363_v46  ;;  %v2052_v46 = vld [vmem:[%s2444_s5] ss:$0 sm:$0xff] }
  0xbf   :  { %v218_v4 = vpop.f32.mrf.mxu0  ;;  %1364 = vrcp.f32 %v398_v20  ;;  %vm404_vm2 = vweird.f32 %v398_v20 }
  0xc0   :  { %v2042_v12 = vadd.f32 %v218_v4, %v152_v2 }
  0xc2   :  { %2486 = vst [vmem:[#allocation25_spill] sm:$0xff] %v2042_v12  ;;  %v408_v12 = vand.u32 2147483647, %v398_v20 }
  0xc4   :  { %vm409_vm4 = vcmp.eq.f32.partialorder %v408_v12, 8.507059e+37 }
  0xc5   :  { %v1365_v41 = vpop.eup %1364 }
  0xc6   :  { %v400_v50 = vmul.f32 %v1365_v41, %v398_v20  ;;  %vm405_vm1 = vweird.f32 %v1365_v41 }
  0xc7   :  { %v221_v29 = vpop.f32.mrf.mxu0  ;;  %vm406_vm3 = vmor %vm404_vm2, %vm405_vm1 }
  0xc8   :  { %v2044_v35 = vadd.f32 %v221_v29, %v152_v2  ;;  %v401_v33 = vsub.f32 1.0, %v400_v50  ;;  %v2055_v50 = vperm.slane %v150_v0, 2 }
  0xca   :  { %2487 = vst [vmem:[#allocation26_spill] sm:$0xff] %v2044_v35  ;;  %v402_v44 = vmul.f32 %v1365_v41, %v401_v33  ;;  %v410_v35 = vand.u32 2147483648, %v398_v20 }
  0xcc   :  { %v403_v2 = vadd.f32 %v1365_v41, %v402_v44  ;;  %v411_v33 = vor.u32 1.1754944e-38, %v410_v35 }
  0xce   :  { %v407_v38 = vsel %vm406_vm3, %v1365_v41, %v403_v2 }
  0xcf   :  { %v391_v4 = vpop.f32.mrf.mxu0 }
  0xd1   :  { %v371_v55 = vpop.f32.mrf.mxu3 }
  0xd2   :  { %v414_v62 = vadd.f32 %v371_v55, %v242_v43  ;;  %v434_v43 = vadd.f32 %v2052_v46, %v391_v4  ;;  %v282_v55 = vpop.f32.mrf.mxu2 }
  0xd3   :  { %v283_v44 = vadd.f32 %v282_v55, %v2055_v50 }
  0xd4   :  { %v1337_v60 = vmul.f32 -1.442695, %v414_v62  ;;  %v412_v62 = vsel %vm409_vm4, %v411_v33, %v407_v38 }
  0xd6   :  { %1366 = vpow2.f32 %v1337_v60  ;;  %v435_v60 = vmul.f32 %v434_v43, %v412_v62  ;;  %v2495_v62 = vld [vmem:[#allocation19_spill] sm:$0xff] }
  0xd8   :  { %v436_v42 = vadd.f32 %v435_v60, %v283_v44  ;;  %v244_v60 = vpop.f32.mrf.mxu1 }
  0xda   :  { %v285_v44 = vpop.f32.mrf.mxu2 }
  0xdc   :  { %v1367_v29 = vpop.eup %1366 }
  0xdd   :  { %v418_v63 = vadd.f32 1.0, %v1367_v29 }
  0xdf   :  { %1368 = vrcp.f32 %v418_v63  ;;  %v430_v20 = vand.u32 2147483648, %v418_v63  ;;  %v428_v41 = vand.u32 2147483647, %v418_v63  ;;  %vm424_vm6 = vweird.f32 %v418_v63 }
  0xe0   :  { %1370 = vtanh.f32 %v436_v42  ;;  %v2491_v42 = vld [vmem:[#allocation11_spill] sm:$0xff] }
  0xe1   :  { %v431_v0 = vor.u32 1.1754944e-38, %v430_v20  ;;  %vm429_vm8 = vcmp.eq.f32.partialorder %v428_v41, 8.507059e+37  ;;  %v2112_v20 = vpop.f32.mrf.mxu1 }
  0xe2   :  { %2496 = vst [vmem:[#allocation28_spill] sm:$0xff] %v2112_v20 }
  0xe5   :  { %v1369_v61 = vpop.eup %1368 }
  0xe6   :  { %v420_v31 = vmul.f32 %v1369_v61, %v418_v63  ;;  %vm425_vm5 = vweird.f32 %v1369_v61  ;;  %v1371_v4 = vpop.eup %1370  ;;  %v2494_v63 = vld [vmem:[#allocation12_spill] sm:$0xff] }
  0xe7   :  { %vm426_vm7 = vmor %vm424_vm6, %vm425_vm5 }
  0xe8   :  { %v421_v59 = vsub.f32 1.0, %v420_v31  ;;  %v2489_v31 = vld [vmem:[#allocation17_spill] sm:$0xff] }
  0xe9   :  { %v2116_v41 = vpop.f32.mrf.mxu1 }
  0xea   :  { %v422_v29 = vmul.f32 %v1369_v61, %v421_v59  ;;  %v2492_v59 = vld [vmem:[#allocation18_spill] sm:$0xff]  ;;  %2498 = vst [vmem:[#allocation30_spill] sm:$0xff] %v2116_v41  ;;  %v2508_v41 = vld [vmem:[#allocation20_spill] sm:$0xff] }
  0xec   :  { %v423_v2 = vadd.f32 %v1369_v61, %v422_v29  ;;  %v2114_v29 = vpop.f32.mrf.mxu2 }
  0xed   :  { %2497 = vst [vmem:[#allocation29_spill] sm:$0xff] %v2114_v29 }
  0xee   :  { %v427_v35 = vsel %vm426_vm7, %v1369_v61, %v423_v2  ;;  %v2493_v61 = vld [vmem:[#allocation15_spill] sm:$0xff] }
  0xef   :  { %v432_v12 = vsel %vm429_vm8, %v431_v0, %v427_v35 }
  0xf0   :  { %v438_v38 = vsub.f32 1.0, %v432_v12  ;;  %v440_v33 = vmul.f32 %v432_v12, %v1762_v34  ;;  %v2490_v34 = vld [vmem:[#allocation14_spill] sm:$0xff] }
  0xf1   :  { %v2120_v0 = vpop.f32.mrf.mxu1 }
  0xf2   :  { %v439_v43 = vmul.f32 %v1371_v4, %v438_v38  ;;  %2500 = vst [vmem:[#allocation32_spill] sm:$0xff] %v2120_v0 }
  0xf4   :  { %v2059_v55 = vadd.f32 %v440_v33, %v439_v43  ;;  %v2118_v2 = vpop.f32.mrf.mxu2 }
  0xf5   :  { %2499 = vst [vmem:[#allocation31_spill] sm:$0xff] %v2118_v2 }
  0xf6   :  { %461 = vmatmul.f32.vlgmr.msrb.gmra.mxu1 %v2059_v55  ;;  %481 = vmatmul.f32.vlgmr.msrb.gmra.mxu2 %v2059_v55 }
  0xf7   :  { %501 = vmatmul.f32.vlgmr.msra.gmra.mxu3 %v2059_v55  ;;  %707 = vmatpush.msrb.mxu1 %v1667_v7 }
  0xf8   :  { %778 = vmatpush.msrb.mxu2 %v1646_v1  ;;  %798 = vmatpush.msra.mxu3 %v1770_v37 }
  0xf9   :  { %708 = vmatpush.msrb.mxu1 %v1673_v9  ;;  %v2124_v12 = vpop.f32.mrf.mxu1 }
  0xfa   :  { %779 = vmatpush.msrb.mxu2 %v1652_v3  ;;  %799 = vmatpush.msra.mxu3 %v1780_v40  ;;  %2502 = vst [vmem:[#allocation34_spill] sm:$0xff] %v2124_v12 }
  0xfb   :  { %709 = vmatpush.msrb.mxu1 %v1678_v11 }
  0xfc   :  { %780 = vmatpush.msrb.mxu2 %v1659_v5  ;;  %800 = vmatpush.msra.mxu3 %v1797_v45  ;;  %v2122_v35 = vpop.f32.mrf.mxu2 }
  0xfd   :  { %710 = vmatpush.msrb.mxu1 %v1689_v14  ;;  %2501 = vst [vmem:[#allocation33_spill] sm:$0xff] %v2122_v35 }
  0xfe   :  { %781 = vmatpush.msrb.mxu2 %v1664_v6  ;;  %801 = vmatpush.msra.mxu3 %v1807_v47 }
  0xff   :  { %711 = vmatpush.msrb.mxu1 %v1696_v16 }
 0x100   :  { %782 = vmatpush.msrb.mxu2 %v1669_v8  ;;  %802 = vmatpush.msra.mxu3 %v1812_v48 }
 0x101   :  { %712 = vmatpush.msrb.mxu1 %v1702_v18  ;;  %v2128_v4 = vpop.f32.mrf.mxu1 }
 0x102   :  { %783 = vmatpush.msrb.mxu2 %v1675_v10  ;;  %803 = vmatpush.msra.mxu3 %v1818_v49  ;;  %2504 = vst [vmem:[#allocation36_spill] sm:$0xff] %v2128_v4 }
 0x103   :  { %713 = vmatpush.msrb.mxu1 %v1715_v21 }
 0x104   :  { %784 = vmatpush.msrb.mxu2 %v1686_v13  ;;  %804 = vmatpush.msra.mxu3 %v1829_v51  ;;  %v2126_v38 = vpop.f32.mrf.mxu2 }
 0x105   :  { %714 = vmatpush.msrb.mxu1 %v1721_v23  ;;  %2503 = vst [vmem:[#allocation35_spill] sm:$0xff] %v2126_v38 }
 0x106   :  { %785 = vmatpush.msrb.mxu2 %v1692_v15  ;;  %805 = vmatpush.msra.mxu3 %v1838_v52 }
 0x107   :  { %715 = vmatpush.msrb.mxu1 %v1729_v25 }
 0x108   :  { %786 = vmatpush.msrb.mxu2 %v1700_v17  ;;  %806 = vmatpush.msra.mxu3 %v1844_v53 }
 0x109   :  { %716 = vmatpush.msrb.mxu1 %v1735_v27  ;;  %v2132_v33 = vpop.f32.mrf.mxu1 }
 0x10a   :  { %787 = vmatpush.msrb.mxu2 %v1706_v19  ;;  %807 = vmatpush.msra.mxu3 %v1850_v54  ;;  %2506 = vst [vmem:[#allocation38_spill] sm:$0xff] %v2132_v33 }
 0x10b   :  { %717 = vmatpush.msrb.mxu1 %v1746_v30 }
 0x10c   :  { %788 = vmatpush.msrb.mxu2 %v1717_v22  ;;  %808 = vmatpush.msra.mxu3 %v1861_v56  ;;  %v2130_v43 = vpop.f32.mrf.mxu2 }
 0x10d   :  { %718 = vmatpush.msrb.mxu1 %v1752_v32  ;;  %2505 = vst [vmem:[#allocation37_spill] sm:$0xff] %v2130_v43 }
 0x10e   :  { %789 = vmatpush.msrb.mxu2 %v1725_v24  ;;  %809 = vmatpush.msra.mxu3 %v1870_v57 }
 0x10f   :  { %719 = vmatpush.msrb.mxu1 %v1768_v36 }
 0x110   :  { %790 = vmatpush.msrb.mxu2 %v1731_v26  ;;  %810 = vmatpush.msra.mxu3 %v1876_v58 }
 0x111   :  { %720 = vmatpush.msrb.mxu1 %v1777_v39 }
 0x112   :  { %791 = vmatpush.msrb.mxu2 %v1737_v28  ;;  %811 = vmatpush.msra.mxu3 %v2489_v31 }
 0x113   :  { %721 = vmatpush.msrb.mxu1 %v2490_v34 }
 0x114   :  { %792 = vmatpush.msrb.mxu2 %v2491_v42  ;;  %812 = vmatpush.msra.mxu3 %v2492_v59  ;;  %v2134_v20 = vpop.f32.mrf.mxu2 }
 0x115   :  { %722 = vmatpush.msrb.mxu1 %v2493_v61  ;;  %2507 = vst [vmem:[#allocation39_spill] sm:$0xff] %v2134_v20 }
 0x116   :  { %793 = vmatpush.msrb.mxu2 %v2494_v63  ;;  %813 = vmatpush.msra.mxu3 %v2495_v62  ;;  %v2509_v63 = vld [vmem:[#allocation27_spill] sm:$0xff] }
 0x117   :  { %v245_v0 = vadd.f32 %v244_v60, %v2509_v63 }
 0x173   :  { %v462_v29 = vpop.f32.mrf.mxu1 }
 0x174   :  { %v505_v62 = vadd.f32 %v462_v29, %v2508_v41 }
 0x176   :  { %v1338_v2 = vmul.f32 -1.442695, %v505_v62 }
 0x178   :  { %1372 = vpow2.f32 %v1338_v2 }
 0x179   :  { %v482_v35 = vpop.f32.mrf.mxu2 }
 0x17a   :  { %v525_v61 = vadd.f32 %v482_v35, %v245_v0  ;;  %v502_v60 = vpop.f32.mrf.mxu3 }
 0x17b   :  { %v545_v35 = vadd.f32 %v2052_v46, %v502_v60 }
 0x17c   :  { %v1339_v12 = vmul.f32 -1.442695, %v525_v61 }
 0x17e   :  { %v1373_v59 = vpop.eup %1372  ;;  %1374 = vpow2.f32 %v1339_v12  ;;  %v286_v12 = vadd.f32 %v285_v44, %v2055_v50 }
 0x17f   :  { %v509_v38 = vadd.f32 1.0, %v1373_v59 }
 0x181   :  { %1376 = vrcp.f32 %v509_v38  ;;  %v521_v34 = vand.u32 2147483648, %v509_v38  ;;  %v519_v62 = vand.u32 2147483647, %v509_v38  ;;  %vm515_vm10 = vweird.f32 %v509_v38 }
 0x183   :  { %v522_v61 = vor.u32 1.1754944e-38, %v521_v34  ;;  %vm520_vm12 = vcmp.eq.f32.partialorder %v519_v62, 8.507059e+37 }
 0x184   :  { %v1375_v4 = vpop.eup %1374 }
 0x185   :  { %v529_v43 = vadd.f32 1.0, %v1375_v4 }
 0x187   :  { %v1377_v42 = vpop.eup %1376  ;;  %1378 = vrcp.f32 %v529_v43  ;;  %v539_v28 = vand.u32 2147483647, %v529_v43  ;;  %vm535_vm14 = vweird.f32 %v529_v43 }
 0x188   :  { %v511_v33 = vmul.f32 %v1377_v42, %v509_v38  ;;  %vm516_vm9 = vweird.f32 %v1377_v42 }
 0x189   :  { %vm517_vm11 = vmor %vm515_vm10, %vm516_vm9  ;;  %vm540_vm0 = vcmp.eq.f32.partialorder %v539_v28, 8.507059e+37 }
 0x18a   :  { %v512_v20 = vsub.f32 1.0, %v511_v33 }
 0x18c   :  { %v513_v31 = vmul.f32 %v1377_v42, %v512_v20  ;;  %v541_v20 = vand.u32 2147483648, %v529_v43 }
 0x18d   :  { %v1379_v29 = vpop.eup %1378 }
 0x18e   :  { %v531_v41 = vmul.f32 %v1379_v29, %v529_v43  ;;  %v514_v2 = vadd.f32 %v1377_v42, %v513_v31  ;;  %vm536_vm13 = vweird.f32 %v1379_v29  ;;  %v542_v34 = vor.u32 1.1754944e-38, %v541_v20  ;;  %v2523_v20 = vld [vmem:[#allocation29_spill] sm:$0xff] }
 0x18f   :  { %vm537_vm15 = vmor %vm535_vm14, %vm536_vm13 }
 0x190   :  { %v532_v0 = vsub.f32 1.0, %v531_v41  ;;  %v518_v59 = vsel %vm517_vm11, %v1377_v42, %v514_v2 }
 0x191   :  { %v523_v4 = vsel %vm520_vm12, %v522_v61, %v518_v59 }
 0x192   :  { %v533_v33 = vmul.f32 %v1379_v29, %v532_v0  ;;  %v546_v63 = vmul.f32 %v545_v35, %v523_v4 }
 0x194   :  { %v547_v39 = vadd.f32 %v546_v63, %v286_v12  ;;  %v534_v58 = vadd.f32 %v1379_v29, %v533_v33 }
 0x196   :  { %1380 = vtanh.f32 %v547_v39  ;;  %v538_v31 = vsel %vm537_vm15, %v1379_v29, %v534_v58 }
 0x197   :  { %v543_v42 = vsel %vm540_vm0, %v542_v34, %v538_v31  ;;  %v289_v31 = vadd.f32 %v2523_v20, %v2055_v50 }
 0x198   :  { %v549_v38 = vsub.f32 1.0, %v543_v42  ;;  %v551_v44 = vmul.f32 %v543_v42, %v2059_v55 }
 0x19c   :  { %v1381_v62 = vpop.eup %1380 }
 0x19d   :  { %v550_v60 = vmul.f32 %v1381_v62, %v549_v38 }
 0x19f   :  { %v2141_v41 = vadd.f32 %v551_v44, %v550_v60 }
 0x1a1   :  { %572 = vmatmul.f32.vlgmr.msra.gmra.mxu0 %v2141_v41  ;;  %592 = vmatmul.f32.vlgmr.msra.gmra.mxu1 %v2141_v41 }
 0x1a2   :  { %612 = vmatmul.f32.vlgmr.msra.gmra.mxu2 %v2141_v41  ;;  %818 = vmatpush.msra.mxu0 %v1667_v7  ;;  %v2514_v7 = vld [vmem:[#allocation14_spill] sm:$0xff] }
 0x1a3   :  { %889 = vmatpush.msra.mxu1 %v1646_v1  ;;  %909 = vmatpush.msra.mxu2 %v1770_v37  ;;  %v2510_v1 = vld [vmem:[#allocation16_spill] sm:$0xff] }
 0x1a4   :  { %819 = vmatpush.msra.mxu0 %v1673_v9  ;;  %v2516_v9 = vld [vmem:[#allocation18_spill] sm:$0xff] }
 0x1a5   :  { %890 = vmatpush.msra.mxu1 %v1652_v3  ;;  %910 = vmatpush.msra.mxu2 %v1780_v40  ;;  %v2511_v3 = vld [vmem:[#allocation13_spill] sm:$0xff] }
 0x1a6   :  { %820 = vmatpush.msra.mxu0 %v1678_v11  ;;  %v2518_v11 = vld [vmem:[#allocation12_spill] sm:$0xff] }
 0x1a7   :  { %891 = vmatpush.msra.mxu1 %v1659_v5  ;;  %911 = vmatpush.msra.mxu2 %v1797_v45  ;;  %v2512_v5 = vld [vmem:[#allocation10_spill] sm:$0xff] }
 0x1a8   :  { %821 = vmatpush.msra.mxu0 %v1689_v14  ;;  %v2520_v14 = vld [vmem:[#allocation27_spill] sm:$0xff] }
 0x1a9   :  { %892 = vmatpush.msra.mxu1 %v1664_v6  ;;  %912 = vmatpush.msra.mxu2 %v1807_v47  ;;  %v2513_v6 = vld [vmem:[#allocation17_spill] sm:$0xff] }
 0x1aa   :  { %822 = vmatpush.msra.mxu0 %v1696_v16 }
 0x1ab   :  { %893 = vmatpush.msra.mxu1 %v1669_v8  ;;  %913 = vmatpush.msra.mxu2 %v1812_v48  ;;  %v2515_v8 = vld [vmem:[#allocation11_spill] sm:$0xff] }
 0x1ac   :  { %823 = vmatpush.msra.mxu0 %v1702_v18 }
 0x1ad   :  { %894 = vmatpush.msra.mxu1 %v1675_v10  ;;  %914 = vmatpush.msra.mxu2 %v1818_v49  ;;  %v2517_v10 = vld [vmem:[#allocation15_spill] sm:$0xff] }
 0x1ae   :  { %824 = vmatpush.msra.mxu0 %v1715_v21 }
 0x1af   :  { %895 = vmatpush.msra.mxu1 %v1686_v13  ;;  %915 = vmatpush.msra.mxu2 %v1829_v51  ;;  %v2519_v13 = vld [vmem:[#allocation19_spill] sm:$0xff] }
 0x1b0   :  { %825 = vmatpush.msra.mxu0 %v1721_v23 }
 0x1b1   :  { %896 = vmatpush.msra.mxu1 %v1692_v15  ;;  %916 = vmatpush.msra.mxu2 %v1838_v52  ;;  %v2521_v15 = vld [vmem:[#allocation28_spill] sm:$0xff] }
 0x1b2   :  { %826 = vmatpush.msra.mxu0 %v1729_v25  ;;  %v248_v16 = vadd.f32 %v2521_v15, %v2520_v14  ;;  %v2206_v15 = vld [vmem:[#allocation3 + $0x178] sm:$0xff] }
 0x1b3   :  { %897 = vmatpush.msra.mxu1 %v1700_v17  ;;  %917 = vmatpush.msra.mxu2 %v1844_v53 }
 0x1b4   :  { %827 = vmatpush.msra.mxu0 %v1735_v27 }
 0x1b5   :  { %898 = vmatpush.msra.mxu1 %v1706_v19  ;;  %918 = vmatpush.msra.mxu2 %v1850_v54  ;;  %v2522_v19 = vld [vmem:[#allocation21_spill] sm:$0xff] }
 0x1b6   :  { %828 = vmatpush.msra.mxu0 %v1746_v30 }
 0x1b7   :  { %899 = vmatpush.msra.mxu1 %v1717_v22  ;;  %919 = vmatpush.msra.mxu2 %v1861_v56 }
 0x1b8   :  { %829 = vmatpush.msra.mxu0 %v1752_v32 }
 0x1b9   :  { %900 = vmatpush.msra.mxu1 %v1725_v24  ;;  %920 = vmatpush.msra.mxu2 %v1870_v57 }
 0x1ba   :  { %830 = vmatpush.msra.mxu0 %v1768_v36 }
 0x1bb   :  { %901 = vmatpush.msra.mxu1 %v1731_v26  ;;  %921 = vmatpush.msra.mxu2 %v2510_v1 }
 0x1bc   :  { %831 = vmatpush.msra.mxu0 %v2511_v3 }
 0x1bd   :  { %902 = vmatpush.msra.mxu1 %v2512_v5  ;;  %922 = vmatpush.msra.mxu2 %v2513_v6 }
 0x1be   :  { %832 = vmatpush.msra.mxu0 %v2514_v7 }
 0x1bf   :  { %903 = vmatpush.msra.mxu1 %v2515_v8  ;;  %923 = vmatpush.msra.mxu2 %v2516_v9 }
 0x1c0   :  { %833 = vmatpush.msra.mxu0 %v2517_v10 }
 0x1c1   :  { %904 = vmatpush.msra.mxu1 %v2518_v11  ;;  %924 = vmatpush.msra.mxu2 %v2519_v13 }
 0x21e   :  { %v573_v17 = vpop.f32.mrf.mxu0  ;;  %v593_v18 = vpop.f32.mrf.mxu1 }
 0x21f   :  { %v616_v21 = vadd.f32 %v573_v17, %v2522_v19  ;;  %v636_v22 = vadd.f32 %v593_v18, %v248_v16  ;;  %v2209_v16 = vld [vmem:[#allocation3 + $0x168] sm:$0xff]  ;;  %v2213_v17 = vld [vmem:[#allocation3 + $0x160] sm:$0xff]  ;;  %v2223_v19 = vld [vmem:[#allocation3 + $0x138] sm:$0xff] }
 0x220   :  { %v2220_v18 = vld [vmem:[#allocation3 + $0x148] sm:$0xff] }
 0x221   :  { %v1340_v23 = vmul.f32 -1.442695, %v616_v21  ;;  %v1341_v24 = vmul.f32 -1.442695, %v636_v22  ;;  %v2230_v21 = vld [vmem:[#allocation3 + $0x120] sm:$0xff]  ;;  %v2237_v22 = vld [vmem:[#allocation3 + $0x108] sm:$0xff] }
 0x223   :  { %1382 = vpow2.f32 %v1340_v23  ;;  %v2244_v23 = vld [vmem:[#allocation3 + $0xf0] sm:$0xff] }
 0x224   :  { %1384 = vpow2.f32 %v1341_v24  ;;  %v2251_v24 = vld [vmem:[#allocation3 + $0xd8] sm:$0xff] }
 0x225   :  { %v613_v61 = vpop.f32.mrf.mxu2 }
 0x226   :  { %v656_v12 = vadd.f32 %v2052_v46, %v613_v61  ;;  %v2525_v61 = vld [vmem:[#allocation22_spill] sm:$0xff] }
 0x229   :  { %v1383_v25 = vpop.eup %1382 }
 0x22a   :  { %v1385_v26 = vpop.eup %1384  ;;  %v620_v27 = vadd.f32 1.0, %v1383_v25  ;;  %v2258_v25 = vld [vmem:[#allocation3 + $0xc0] sm:$0xff] }
 0x22b   :  { %v640_v28 = vadd.f32 1.0, %v1385_v26  ;;  %v2265_v26 = vld [vmem:[#allocation3 + $0xa8] sm:$0xff] }
 0x22c   :  { %1386 = vrcp.f32 %v620_v27  ;;  %v632_v63 = vand.u32 2147483648, %v620_v27  ;;  %v630_v29 = vand.u32 2147483647, %v620_v27  ;;  %vm626_vm2 = vweird.f32 %v620_v27 }
 0x22d   :  { %1388 = vrcp.f32 %v640_v28  ;;  %v652_v42 = vand.u32 2147483648, %v640_v28  ;;  %vm646_vm6 = vweird.f32 %v640_v28  ;;  %v650_v38 = vand.u32 2147483647, %v640_v28 }
 0x22e   :  { %v633_v59 = vor.u32 1.1754944e-38, %v632_v63  ;;  %vm631_vm4 = vcmp.eq.f32.partialorder %v630_v29, 8.507059e+37 }
 0x22f   :  { %v653_v44 = vor.u32 1.1754944e-38, %v652_v42  ;;  %vm651_vm8 = vcmp.eq.f32.partialorder %v650_v38, 8.507059e+37 }
 0x232   :  { %v1387_v30 = vpop.eup %1386 }
 0x233   :  { %v1389_v32 = vpop.eup %1388  ;;  %v622_v36 = vmul.f32 %v1387_v30, %v620_v27  ;;  %vm627_vm1 = vweird.f32 %v1387_v30  ;;  %v2272_v27 = vld [vmem:[#allocation3 + $0x90] sm:$0xff] }
 0x234   :  { %v642_v39 = vmul.f32 %v1389_v32, %v640_v28  ;;  %vm628_vm3 = vmor %vm626_vm2, %vm627_vm1  ;;  %vm647_vm5 = vweird.f32 %v1389_v32  ;;  %v2279_v28 = vld [vmem:[#allocation3 + $0x78] sm:$0xff] }
 0x235   :  { %v623_v58 = vsub.f32 1.0, %v622_v36  ;;  %vm648_vm7 = vmor %vm646_vm6, %vm647_vm5  ;;  %v2300_v36 = vld [vmem:[#allocation3 + $0x30] sm:$0xff] }
 0x236   :  { %v643_v55 = vsub.f32 1.0, %v642_v39  ;;  %v2307_v39 = vld [vmem:[#allocation3 + $0x18] sm:$0xff] }
 0x237   :  { %v624_v43 = vmul.f32 %v1387_v30, %v623_v58  ;;  %v2314_v58 = vld [vmem:[#allocation3] sm:$0xff] }
 0x238   :  { %v644_v2 = vmul.f32 %v1389_v32, %v643_v55 }
 0x239   :  { %v625_v0 = vadd.f32 %v1387_v30, %v624_v43 }
 0x23a   :  { %v645_v33 = vadd.f32 %v1389_v32, %v644_v2 }
 0x23b   :  { %v629_v35 = vsel %vm628_vm3, %v1387_v30, %v625_v0  ;;  %v2286_v30 = vld [vmem:[#allocation3 + $0x60] sm:$0xff] }
 0x23c   :  { %v634_v4 = vsel %vm631_vm4, %v633_v59, %v629_v35  ;;  %v649_v60 = vsel %vm648_vm7, %v1389_v32, %v645_v33  ;;  %v2293_v32 = vld [vmem:[#allocation3 + $0x48] sm:$0xff] }
 0x23d   :  { %v657_v34 = vmul.f32 %v656_v12, %v634_v4  ;;  %v654_v3 = vsel %vm651_vm8, %v653_v44, %v649_v60 }
 0x23e   :  { %v660_v5 = vsub.f32 1.0, %v654_v3  ;;  %v662_v10 = vmul.f32 %v654_v3, %v2141_v41  ;;  %v2216_v41 = vld [vmem:[#allocation3 + $0x150] sm:$0xff] }
 0x23f   :  { %v658_v62 = vadd.f32 %v657_v34, %v289_v31 }
 0x241   :  { %1390 = vtanh.f32 %v658_v62 }
 0x247   :  { %v1391_v7 = vpop.eup %1390 }
 0x248   :  { %v661_v8 = vmul.f32 %v1391_v7, %v660_v5 }
 0x24a   :  { %v2201_v11 = vadd.f32 %v662_v10, %v661_v8 }
 0x24c   :  { %683 = vmatmul.f32.vlgmr.msrb.gmra.mxu3 %v2201_v11  ;;  %703 = vmatmul.f32.vlgmr.msrb.gmra.mxu0 %v2201_v11 }
 0x24d   :  { %723 = vmatmul.f32.vlgmr.msrb.gmra.mxu1 %v2201_v11  ;;  %929 = vmatpush.msrb.mxu3 %v2206_v15 }
 0x24e   :  { %1000 = vmatpush.msrb.mxu0 %v2209_v16  ;;  %1020 = vmatpush.msrb.mxu1 %v1770_v37  ;;  %v2227_v37 = vld [vmem:[#allocation3 + $0x130] sm:$0xff] }
 0x24f   :  { %930 = vmatpush.msrb.mxu3 %v2213_v17 }
 0x250   :  { %1001 = vmatpush.msrb.mxu0 %v2216_v41  ;;  %1021 = vmatpush.msrb.mxu1 %v1780_v40  ;;  %v2234_v40 = vld [vmem:[#allocation3 + $0x118] sm:$0xff] }
 0x251   :  { %931 = vmatpush.msrb.mxu3 %v2220_v18 }
 0x252   :  { %1002 = vmatpush.msrb.mxu0 %v2223_v19  ;;  %1022 = vmatpush.msrb.mxu1 %v1797_v45  ;;  %v2241_v45 = vld [vmem:[#allocation3 + $0x100] sm:$0xff] }
 0x253   :  { %932 = vmatpush.msrb.mxu3 %v2227_v37 }
 0x254   :  { %1003 = vmatpush.msrb.mxu0 %v2230_v21  ;;  %1023 = vmatpush.msrb.mxu1 %v1807_v47  ;;  %v2248_v47 = vld [vmem:[#allocation3 + $0xe8] sm:$0xff] }
 0x255   :  { %933 = vmatpush.msrb.mxu3 %v2234_v40 }
 0x256   :  { %1004 = vmatpush.msrb.mxu0 %v2237_v22  ;;  %1024 = vmatpush.msrb.mxu1 %v1812_v48  ;;  %v2255_v48 = vld [vmem:[#allocation3 + $0xd0] sm:$0xff] }
 0x257   :  { %934 = vmatpush.msrb.mxu3 %v2241_v45 }
 0x258   :  { %1005 = vmatpush.msrb.mxu0 %v2244_v23  ;;  %1025 = vmatpush.msrb.mxu1 %v1818_v49  ;;  %v2262_v49 = vld [vmem:[#allocation3 + $0xb8] sm:$0xff] }
 0x259   :  { %935 = vmatpush.msrb.mxu3 %v2248_v47 }
 0x25a   :  { %1006 = vmatpush.msrb.mxu0 %v2251_v24  ;;  %1026 = vmatpush.msrb.mxu1 %v1829_v51  ;;  %v2269_v51 = vld [vmem:[#allocation3 + $0xa0] sm:$0xff] }
 0x25b   :  { %936 = vmatpush.msrb.mxu3 %v2255_v48 }
 0x25c   :  { %1007 = vmatpush.msrb.mxu0 %v2258_v25  ;;  %1027 = vmatpush.msrb.mxu1 %v1838_v52  ;;  %v2276_v52 = vld [vmem:[#allocation3 + $0x88] sm:$0xff] }
 0x25d   :  { %937 = vmatpush.msrb.mxu3 %v2262_v49 }
 0x25e   :  { %1008 = vmatpush.msrb.mxu0 %v2265_v26  ;;  %1028 = vmatpush.msrb.mxu1 %v1844_v53  ;;  %v2283_v53 = vld [vmem:[#allocation3 + $0x70] sm:$0xff] }
 0x25f   :  { %938 = vmatpush.msrb.mxu3 %v2269_v51 }
 0x260   :  { %1009 = vmatpush.msrb.mxu0 %v2272_v27  ;;  %1029 = vmatpush.msrb.mxu1 %v1850_v54  ;;  %v2290_v54 = vld [vmem:[#allocation3 + $0x58] sm:$0xff] }
 0x261   :  { %939 = vmatpush.msrb.mxu3 %v2276_v52 }
 0x262   :  { %1010 = vmatpush.msrb.mxu0 %v2279_v28  ;;  %1030 = vmatpush.msrb.mxu1 %v1861_v56  ;;  %v2297_v56 = vld [vmem:[#allocation3 + $0x40] sm:$0xff] }
 0x263   :  { %940 = vmatpush.msrb.mxu3 %v2283_v53 }
 0x264   :  { %1011 = vmatpush.msrb.mxu0 %v2286_v30  ;;  %1031 = vmatpush.msrb.mxu1 %v1870_v57  ;;  %v2304_v57 = vld [vmem:[#allocation3 + $0x28] sm:$0xff] }
 0x265   :  { %941 = vmatpush.msrb.mxu3 %v2290_v54 }
 0x266   :  { %1012 = vmatpush.msrb.mxu0 %v2293_v32  ;;  %1032 = vmatpush.msrb.mxu1 %v2510_v1  ;;  %v2311_v1 = vld [vmem:[#allocation3 + $0x10] sm:$0xff] }
 0x267   :  { %942 = vmatpush.msrb.mxu3 %v2297_v56 }
 0x268   :  { %1013 = vmatpush.msrb.mxu0 %v2300_v36  ;;  %1033 = vmatpush.msrb.mxu1 %v2513_v6  ;;  %v2524_v6 = vld [vmem:[#allocation30_spill] sm:$0xff] }
 0x269   :  { %943 = vmatpush.msrb.mxu3 %v2304_v57  ;;  %v251_v55 = vadd.f32 %v2524_v6, %v2520_v14 }
 0x26a   :  { %1014 = vmatpush.msrb.mxu0 %v2307_v39  ;;  %1034 = vmatpush.msrb.mxu1 %v2516_v9 }
 0x26b   :  { %944 = vmatpush.msrb.mxu3 %v2311_v1 }
 0x26c   :  { %1015 = vmatpush.msrb.mxu0 %v2314_v58  ;;  %1035 = vmatpush.msrb.mxu1 %v2519_v13 }
 0x2c9   :  { %v704_v63 = vpop.f32.mrf.mxu0 }
 0x2ca   :  { %v747_v43 = vadd.f32 %v704_v63, %v251_v55  ;;  %v724_v3 = vpop.f32.mrf.mxu1  ;;  %v2526_v63 = vld [vmem:[#allocation31_spill] sm:$0xff] }
 0x2cb   :  { %v767_v8 = vadd.f32 %v2052_v46, %v724_v3 }
 0x2cc   :  { %v1343_v29 = vmul.f32 -1.442695, %v747_v43  ;;  %v292_v43 = vadd.f32 %v2526_v63, %v2055_v50 }
 0x2ce   :  { %1392 = vpow2.f32 %v1343_v29 }
 0x2cf   :  { %v684_v2 = vpop.f32.mrf.mxu3 }
 0x2d0   :  { %v727_v9 = vadd.f32 %v684_v2, %v2525_v61 }
 0x2d2   :  { %v1342_v0 = vmul.f32 -1.442695, %v727_v9 }
 0x2d4   :  { %v1393_v59 = vpop.eup %1392  ;;  %1394 = vpow2.f32 %v1342_v0 }
 0x2d5   :  { %v751_v35 = vadd.f32 1.0, %v1393_v59 }
 0x2d7   :  { %1396 = vrcp.f32 %v751_v35  ;;  %v763_v29 = vand.u32 2147483648, %v751_v35  ;;  %vm757_vm14 = vweird.f32 %v751_v35  ;;  %v761_v61 = vand.u32 2147483647, %v751_v35 }
 0x2d9   :  { %v764_v59 = vor.u32 1.1754944e-38, %v763_v29  ;;  %vm762_vm0 = vcmp.eq.f32.partialorder %v761_v61, 8.507059e+37 }
 0x2da   :  { %v1395_v12 = vpop.eup %1394 }
 0x2db   :  { %v731_v4 = vadd.f32 1.0, %v1395_v12 }
 0x2dd   :  { %1398 = vrcp.f32 %v731_v4  ;;  %v1397_v33 = vpop.eup %1396  ;;  %v743_v38 = vand.u32 2147483648, %v731_v4  ;;  %v741_v60 = vand.u32 2147483647, %v731_v4  ;;  %vm737_vm10 = vweird.f32 %v731_v4 }
 0x2de   :  { %v753_v13 = vmul.f32 %v1397_v33, %v751_v35  ;;  %vm758_vm13 = vweird.f32 %v1397_v33  ;;  %v1474_v35 = vld [vmem:[#allocation3 + $0x170] sm:$0xff] }
 0x2df   :  { %v744_v7 = vor.u32 1.1754944e-38, %v743_v38  ;;  %vm742_vm12 = vcmp.eq.f32.partialorder %v741_v60, 8.507059e+37  ;;  %vm759_vm15 = vmor %vm757_vm14, %vm758_vm13 }
 0x2e0   :  { %v754_v34 = vsub.f32 1.0, %v753_v13 }
 0x2e2   :  { %v755_v44 = vmul.f32 %v1397_v33, %v754_v34 }
 0x2e3   :  { %v1399_v20 = vpop.eup %1398 }
 0x2e4   :  { %v733_v31 = vmul.f32 %v1399_v20, %v731_v4  ;;  %vm738_vm9 = vweird.f32 %v1399_v20  ;;  %v756_v55 = vadd.f32 %v1397_v33, %v755_v44 }
 0x2e5   :  { %vm739_vm11 = vmor %vm737_vm10, %vm738_vm9 }
 0x2e6   :  { %v734_v42 = vsub.f32 1.0, %v733_v31  ;;  %v760_v0 = vsel %vm759_vm15, %v1397_v33, %v756_v55  ;;  %v1475_v33 = vld [vmem:[#allocation3 + $0x158] sm:$0xff] }
 0x2e7   :  { %v765_v12 = vsel %vm762_vm0, %v764_v59, %v760_v0 }
 0x2e8   :  { %v735_v62 = vmul.f32 %v1399_v20, %v734_v42  ;;  %v771_v4 = vsub.f32 1.0, %v765_v12  ;;  %v773_v31 = vmul.f32 %v765_v12, %v2201_v11  ;;  %v1476_v11 = vld [vmem:[#allocation3 + $0x140] sm:$0xff]  ;;  %v1477_v42 = vld [vmem:[#allocation3 + $0x128] sm:$0xff] }
 0x2ea   :  { %v736_v5 = vadd.f32 %v1399_v20, %v735_v62 }
 0x2ec   :  { %v740_v10 = vsel %vm739_vm11, %v1399_v20, %v736_v5 }
 0x2ed   :  { %v745_v6 = vsel %vm742_vm12, %v744_v7, %v740_v10 }
 0x2ee   :  { %v768_v2 = vmul.f32 %v767_v8, %v745_v6 }
 0x2f0   :  { %v769_v9 = vadd.f32 %v768_v2, %v292_v43 }
 0x2f2   :  { %1400 = vtanh.f32 %v769_v9 }
 0x2f8   :  { %v1401_v13 = vpop.eup %1400 }
 0x2f9   :  { %v772_v20 = vmul.f32 %v1401_v13, %v771_v4 }
 0x2fb   :  { %v2325_v34 = vadd.f32 %v773_v31, %v772_v20 }
 0x2fd   :  { %794 = vmatmul.f32.vlgmr.msrb.gmra.mxu2 %v2325_v34  ;;  %814 = vmatmul.f32.vlgmr.msra.gmra.mxu3 %v2325_v34 }
 0x2fe   :  { %834 = vmatmul.f32.vlgmr.msra.gmra.mxu0 %v2325_v34  ;;  %1040 = vmatpush.msrb.mxu2 %v2206_v15 }
 0x2ff   :  { %1111 = vmatpush.msra.mxu3 %v2209_v16  ;;  %1131 = vmatpush.msra.mxu0 %v1474_v35  ;;  %v1478_v16 = vld [vmem:[#allocation3 + $0x110] sm:$0xff] }
 0x300   :  { %1041 = vmatpush.msrb.mxu2 %v2213_v17 }
 0x301   :  { %1112 = vmatpush.msra.mxu3 %v2216_v41  ;;  %1132 = vmatpush.msra.mxu0 %v1475_v33  ;;  %v1479_v41 = vld [vmem:[#allocation3 + $0xf8] sm:$0xff] }
 0x302   :  { %1042 = vmatpush.msrb.mxu2 %v2220_v18 }
 0x303   :  { %1113 = vmatpush.msra.mxu3 %v2223_v19  ;;  %1133 = vmatpush.msra.mxu0 %v1476_v11  ;;  %v1480_v19 = vld [vmem:[#allocation3 + $0xe0] sm:$0xff]  ;;  %v2529_v11 = vld [vmem:[#allocation33_spill] sm:$0xff] }
 0x304   :  { %1043 = vmatpush.msrb.mxu2 %v2227_v37 }
 0x305   :  { %1114 = vmatpush.msra.mxu3 %v2230_v21  ;;  %1134 = vmatpush.msra.mxu0 %v1477_v42  ;;  %v1481_v21 = vld [vmem:[#allocation3 + $0xc8] sm:$0xff]  ;;  %v295_v42 = vadd.f32 %v2529_v11, %v2055_v50 }
 0x306   :  { %1044 = vmatpush.msrb.mxu2 %v2234_v40 }
 0x307   :  { %1115 = vmatpush.msra.mxu3 %v2237_v22  ;;  %1135 = vmatpush.msra.mxu0 %v1478_v16  ;;  %v1482_v22 = vld [vmem:[#allocation3 + $0xb0] sm:$0xff] }
 0x308   :  { %1045 = vmatpush.msrb.mxu2 %v2241_v45 }
 0x309   :  { %1116 = vmatpush.msra.mxu3 %v2244_v23  ;;  %1136 = vmatpush.msra.mxu0 %v1479_v41  ;;  %v1483_v23 = vld [vmem:[#allocation3 + $0x98] sm:$0xff] }
 0x30a   :  { %1046 = vmatpush.msrb.mxu2 %v2248_v47 }
 0x30b   :  { %1117 = vmatpush.msra.mxu3 %v2251_v24  ;;  %1137 = vmatpush.msra.mxu0 %v1480_v19  ;;  %v1484_v24 = vld [vmem:[#allocation3 + $0x80] sm:$0xff] }
 0x30c   :  { %1047 = vmatpush.msrb.mxu2 %v2255_v48 }
 0x30d   :  { %1118 = vmatpush.msra.mxu3 %v2258_v25  ;;  %1138 = vmatpush.msra.mxu0 %v1481_v21  ;;  %v1485_v25 = vld [vmem:[#allocation3 + $0x68] sm:$0xff] }
 0x30e   :  { %1048 = vmatpush.msrb.mxu2 %v2262_v49 }
 0x30f   :  { %1119 = vmatpush.msra.mxu3 %v2265_v26  ;;  %1139 = vmatpush.msra.mxu0 %v1482_v22  ;;  %v1486_v26 = vld [vmem:[#allocation3 + $0x50] sm:$0xff] }
 0x310   :  { %1049 = vmatpush.msrb.mxu2 %v2269_v51 }
 0x311   :  { %1120 = vmatpush.msra.mxu3 %v2272_v27  ;;  %1140 = vmatpush.msra.mxu0 %v1483_v23  ;;  %v1487_v27 = vld [vmem:[#allocation3 + $0x38] sm:$0xff] }
 0x312   :  { %1050 = vmatpush.msrb.mxu2 %v2276_v52 }
 0x313   :  { %1121 = vmatpush.msra.mxu3 %v2279_v28  ;;  %1141 = vmatpush.msra.mxu0 %v1484_v24  ;;  %v1488_v28 = vld [vmem:[#allocation3 + $0x20] sm:$0xff] }
 0x314   :  { %1051 = vmatpush.msrb.mxu2 %v2283_v53 }
 0x315   :  { %1122 = vmatpush.msra.mxu3 %v2286_v30  ;;  %1142 = vmatpush.msra.mxu0 %v1485_v25  ;;  %v1489_v30 = vld [vmem:[#allocation3 + $0x8] sm:$0xff] }
 0x316   :  { %1052 = vmatpush.msrb.mxu2 %v2290_v54 }
 0x317   :  { %1123 = vmatpush.msra.mxu3 %v2293_v32  ;;  %1143 = vmatpush.msra.mxu0 %v1486_v26  ;;  %v2527_v32 = vld [vmem:[#allocation32_spill] sm:$0xff] }
 0x318   :  { %1053 = vmatpush.msrb.mxu2 %v2297_v56  ;;  %v254_v38 = vadd.f32 %v2527_v32, %v2520_v14 }
 0x319   :  { %1124 = vmatpush.msra.mxu3 %v2300_v36  ;;  %1144 = vmatpush.msra.mxu0 %v1487_v27  ;;  %v2528_v36 = vld [vmem:[#allocation23_spill] sm:$0xff] }
 0x31a   :  { %1054 = vmatpush.msrb.mxu2 %v2304_v57 }
 0x31b   :  { %1125 = vmatpush.msra.mxu3 %v2307_v39  ;;  %1145 = vmatpush.msra.mxu0 %v1488_v28 }
 0x31c   :  { %1055 = vmatpush.msrb.mxu2 %v2311_v1 }
 0x31d   :  { %1126 = vmatpush.msra.mxu3 %v2314_v58  ;;  %1146 = vmatpush.msra.mxu0 %v1489_v30 }
 0x37b   :  { %v835_v59 = vpop.f32.mrf.mxu0 }
 0x37c   :  { %v878_v20 = vadd.f32 %v2052_v46, %v835_v59 }
 0x380   :  { %v795_v62 = vpop.f32.mrf.mxu2  ;;  %v815_v60 = vpop.f32.mrf.mxu3 }
 0x381   :  { %v838_v44 = vadd.f32 %v795_v62, %v2528_v36  ;;  %v858_v3 = vadd.f32 %v815_v60, %v254_v38 }
 0x383   :  { %v1344_v5 = vmul.f32 -1.442695, %v838_v44  ;;  %v1345_v7 = vmul.f32 -1.442695, %v858_v3 }
 0x385   :  { %1402 = vpow2.f32 %v1344_v5 }
 0x386   :  { %1404 = vpow2.f32 %v1345_v7  ;;  %v2396_v7 = vld [vmem:[%s2444_s5] ss:$0 sm:$0xff] }
 0x38b   :  { %v1403_v39 = vpop.eup %1402 }
 0x38c   :  { %v1405_v8 = vpop.eup %1404  ;;  %v842_v10 = vadd.f32 1.0, %v1403_v39 }
 0x38d   :  { %v862_v6 = vadd.f32 1.0, %v1405_v8  ;;  %v2532_v8 = vld [vmem:[#allocation35_spill] sm:$0xff] }
 0x38e   :  { %1406 = vrcp.f32 %v842_v10  ;;  %v854_v2 = vand.u32 2147483648, %v842_v10  ;;  %v852_v0 = vand.u32 2147483647, %v842_v10  ;;  %vm848_vm2 = vweird.f32 %v842_v10 }
 0x38f   :  { %1408 = vrcp.f32 %v862_v6  ;;  %v874_v16 = vand.u32 2147483648, %v862_v6  ;;  %vm868_vm6 = vweird.f32 %v862_v6  ;;  %v872_v19 = vand.u32 2147483647, %v862_v6 }
 0x390   :  { %v855_v13 = vor.u32 1.1754944e-38, %v854_v2  ;;  %vm853_vm4 = vcmp.eq.f32.partialorder %v852_v0, 8.507059e+37 }
 0x391   :  { %v875_v23 = vor.u32 1.1754944e-38, %v874_v16  ;;  %vm873_vm8 = vcmp.eq.f32.partialorder %v872_v19, 8.507059e+37 }
 0x394   :  { %v1407_v58 = vpop.eup %1406 }
 0x395   :  { %v1409_v55 = vpop.eup %1408  ;;  %v844_v63 = vmul.f32 %v1407_v58, %v842_v10  ;;  %vm849_vm1 = vweird.f32 %v1407_v58  ;;  %v298_v10 = vadd.f32 %v2532_v8, %v2055_v50  ;;  %v1234_v8 = vld [vmem:[#allocation5 + $0x78] sm:$0xff] }
 0x396   :  { %v864_v43 = vmul.f32 %v1409_v55, %v862_v6  ;;  %vm850_vm3 = vmor %vm848_vm2, %vm849_vm1  ;;  %vm869_vm5 = vweird.f32 %v1409_v55 }
 0x397   :  { %v845_v29 = vsub.f32 1.0, %v844_v63  ;;  %vm870_vm7 = vmor %vm868_vm6, %vm869_vm5 }
 0x398   :  { %v865_v61 = vsub.f32 1.0, %v864_v43 }
 0x399   :  { %v846_v9 = vmul.f32 %v1407_v58, %v845_v29 }
 0x39a   :  { %v866_v12 = vmul.f32 %v1409_v55, %v865_v61 }
 0x39b   :  { %v847_v4 = vadd.f32 %v1407_v58, %v846_v9 }
 0x39c   :  { %v867_v33 = vadd.f32 %v1409_v55, %v866_v12 }
 0x39d   :  { %v851_v31 = vsel %vm850_vm3, %v1407_v58, %v847_v4 }
 0x39e   :  { %v856_v35 = vsel %vm853_vm4, %v855_v13, %v851_v31  ;;  %v871_v22 = vsel %vm870_vm7, %v1409_v55, %v867_v33  ;;  %v2533_v31 = vld [vmem:[#allocation36_spill] sm:$0xff] }
 0x39f   :  { %v879_v41 = vmul.f32 %v878_v20, %v856_v35  ;;  %v876_v24 = vsel %vm873_vm8, %v875_v23, %v871_v22  ;;  %v260_v35 = vadd.f32 %v2533_v31, %v2520_v14 }
 0x3a0   :  { %v882_v46 = vsub.f32 1.0, %v876_v24  ;;  %v884_v27 = vmul.f32 %v876_v24, %v2325_v34 }
 0x3a1   :  { %v880_v21 = vadd.f32 %v879_v41, %v295_v42  ;;  %v2534_v42 = vld [vmem:[#allocation25_spill] sm:$0xff] }
 0x3a3   :  { %1410 = vtanh.f32 %v880_v21 }
 0x3a9   :  { %v1411_v25 = vpop.eup %1410 }
 0x3aa   :  { %v883_v26 = vmul.f32 %v1411_v25, %v882_v46 }
 0x3ac   :  { %v2369_v28 = vadd.f32 %v884_v27, %v883_v26 }
 0x3ae   :  { %905 = vmatmul.f32.vlgmr.msra.gmra.mxu1 %v2369_v28  ;;  %925 = vmatmul.f32.vlgmr.msra.gmra.mxu2 %v2369_v28 }
 0x3af   :  { %945 = vmatmul.f32.vlgmr.msrb.gmra.mxu3 %v2369_v28  ;;  %1151 = vmatpush.msra.mxu1 %v2206_v15 }
 0x3b0   :  { %1239 = vmatpush.msra.mxu2 %v1234_v8  ;;  %v1265_v8 = vld [vmem:[#allocation7 + $0x28] sm:$0xff] }
 0x3b1   :  { %1152 = vmatpush.msra.mxu1 %v2213_v17  ;;  %v2530_v17 = vld [vmem:[#allocation24_spill] sm:$0xff] }
 0x3b3   :  { %1153 = vmatpush.msra.mxu1 %v2220_v18 }
 0x3b5   :  { %1154 = vmatpush.msra.mxu1 %v2227_v37 }
 0x3b7   :  { %1155 = vmatpush.msra.mxu1 %v2234_v40  ;;  %v2531_v40 = vld [vmem:[#allocation34_spill] sm:$0xff] }
 0x3b9   :  { %1156 = vmatpush.msra.mxu1 %v2241_v45  ;;  %v257_v45 = vadd.f32 %v2531_v40, %v2520_v14 }
 0x3bb   :  { %1157 = vmatpush.msra.mxu1 %v2248_v47 }
 0x3bd   :  { %1158 = vmatpush.msra.mxu1 %v2255_v48 }
 0x3bf   :  { %1159 = vmatpush.msra.mxu1 %v2262_v49 }
 0x3c1   :  { %1160 = vmatpush.msra.mxu1 %v2269_v51 }
 0x3c3   :  { %1161 = vmatpush.msra.mxu1 %v2276_v52 }
 0x3c5   :  { %1162 = vmatpush.msra.mxu1 %v2283_v53 }
 0x3c7   :  { %1163 = vmatpush.msra.mxu1 %v2290_v54 }
 0x3c9   :  { %1164 = vmatpush.msra.mxu1 %v2297_v56 }
 0x3cb   :  { %1165 = vmatpush.msra.mxu1 %v2304_v57 }
 0x3cd   :  { %1166 = vmatpush.msra.mxu1 %v2311_v1 }
 0x42b   :  { %v906_v15 = vpop.f32.mrf.mxu1 }
 0x42c   :  { %v949_v18 = vadd.f32 %v906_v15, %v2530_v17 }
 0x42e   :  { %v1346_v37 = vmul.f32 -1.442695, %v949_v18 }
 0x430   :  { %1412 = vpow2.f32 %v1346_v37 }
 0x431   :  { %v926_v47 = vpop.f32.mrf.mxu2 }
 0x432   :  { %v969_v48 = vadd.f32 %v926_v47, %v257_v45  ;;  %v946_v62 = vpop.f32.mrf.mxu3 }
 0x433   :  { %v989_v39 = vadd.f32 %v2396_v7, %v946_v62 }
 0x434   :  { %v1347_v49 = vmul.f32 -1.442695, %v969_v48 }
 0x436   :  { %v1413_v51 = vpop.eup %1412  ;;  %1414 = vpow2.f32 %v1347_v49 }
 0x437   :  { %v953_v52 = vadd.f32 1.0, %v1413_v51 }
 0x439   :  { %1416 = vrcp.f32 %v953_v52  ;;  %v965_v34 = vand.u32 2147483648, %v953_v52  ;;  %v963_v32 = vand.u32 2147483647, %v953_v52  ;;  %vm959_vm10 = vweird.f32 %v953_v52 }
 0x43b   :  { %v966_v44 = vor.u32 1.1754944e-38, %v965_v34  ;;  %vm964_vm12 = vcmp.eq.f32.partialorder %v963_v32, 8.507059e+37 }
 0x43c   :  { %v1415_v53 = vpop.eup %1414 }
 0x43d   :  { %v973_v54 = vadd.f32 1.0, %v1415_v53 }
 0x43f   :  { %v1417_v56 = vpop.eup %1416  ;;  %1418 = vrcp.f32 %v973_v54  ;;  %v985_v63 = vand.u32 2147483648, %v973_v54  ;;  %v983_v43 = vand.u32 2147483647, %v973_v54  ;;  %vm979_vm14 = vweird.f32 %v973_v54 }
 0x440   :  { %v955_v57 = vmul.f32 %v1417_v56, %v953_v52  ;;  %vm960_vm9 = vweird.f32 %v1417_v56 }
 0x441   :  { %vm961_vm11 = vmor %vm959_vm10, %vm960_vm9  ;;  %v986_v9 = vor.u32 1.1754944e-38, %v985_v63  ;;  %vm984_vm0 = vcmp.eq.f32.partialorder %v983_v43, 8.507059e+37  ;;  %v2536_v63 = vld [vmem:[#allocation38_spill] sm:$0xff] }
 0x442   :  { %v956_v1 = vsub.f32 1.0, %v955_v57  ;;  %v263_v43 = vadd.f32 %v2536_v63, %v2520_v14  ;;  %v1223_v14 = vld [vmem:[#allocation5 + $0x20] sm:$0xff] }
 0x444   :  { %v957_v30 = vmul.f32 %v1417_v56, %v956_v1 }
 0x445   :  { %v1419_v38 = vpop.eup %1418 }
 0x446   :  { %v975_v60 = vmul.f32 %v1419_v38, %v973_v54  ;;  %v958_v36 = vadd.f32 %v1417_v56, %v957_v30  ;;  %vm980_vm13 = vweird.f32 %v1419_v38 }
 0x447   :  { %vm981_vm15 = vmor %vm979_vm14, %vm980_vm13 }
 0x448   :  { %v976_v3 = vsub.f32 1.0, %v975_v60  ;;  %v962_v5 = vsel %vm961_vm11, %v1417_v56, %v958_v36  ;;  %v2535_v56 = vld [vmem:[#allocation37_spill] sm:$0xff] }
 0x449   :  { %v967_v6 = vsel %vm964_vm12, %v966_v44, %v962_v5  ;;  %v301_v57 = vadd.f32 %v2535_v56, %v2055_v50 }
 0x44a   :  { %v977_v58 = vmul.f32 %v1419_v38, %v976_v3  ;;  %v990_v55 = vmul.f32 %v989_v39, %v967_v6  ;;  %v1232_v6 = vld [vmem:[#allocation5 + $0x68] sm:$0xff] }
 0x44c   :  { %v991_v29 = vadd.f32 %v990_v55, %v298_v10  ;;  %v978_v2 = vadd.f32 %v1419_v38, %v977_v58  ;;  %v1233_v10 = vld [vmem:[#allocation5 + $0x70] sm:$0xff]  ;;  %v1231_v58 = vld [vmem:[#allocation5 + $0x60] sm:$0xff]  ;;  %v1230_v55 = vld [vmem:[#allocation5 + $0x58] sm:$0xff] }
 0x44d   :  { %1240 = vmatpush.msra.mxu2 %v1233_v10 }
 0x44e   :  { %1420 = vtanh.f32 %v991_v29  ;;  %v982_v61 = vsel %vm981_vm15, %v1419_v38, %v978_v2  ;;  %v1229_v29 = vld [vmem:[#allocation5 + $0x50] sm:$0xff] }
 0x44f   :  { %v987_v0 = vsel %vm984_vm0, %v986_v9, %v982_v61  ;;  %1241 = vmatpush.msra.mxu2 %v1232_v6  ;;  %v1228_v9 = vld [vmem:[#allocation5 + $0x48] sm:$0xff]  ;;  %v1264_v6 = vld [vmem:[#allocation7 + $0x20] sm:$0xff] }
 0x450   :  { %v993_v59 = vsub.f32 1.0, %v987_v0  ;;  %v995_v13 = vmul.f32 %v987_v0, %v2369_v28 }
 0x451   :  { %1242 = vmatpush.msra.mxu2 %v1231_v58 }
 0x453   :  { %1243 = vmatpush.msra.mxu2 %v1230_v55  ;;  %v1263_v55 = vld [vmem:[#allocation7 + $0x18] sm:$0xff] }
 0x454   :  { %v1421_v12 = vpop.eup %1420 }
 0x455   :  { %v994_v4 = vmul.f32 %v1421_v12, %v993_v59  ;;  %1244 = vmatpush.msra.mxu2 %v1229_v29  ;;  %v1227_v59 = vld [vmem:[#allocation5 + $0x40] sm:$0xff]  ;;  %v1226_v12 = vld [vmem:[#allocation5 + $0x38] sm:$0xff] }
 0x457   :  { %v996_v20 = vadd.f32 %v995_v13, %v994_v4  ;;  %1245 = vmatpush.msra.mxu2 %v1228_v9  ;;  %v1225_v4 = vld [vmem:[#allocation5 + $0x30] sm:$0xff] }
 0x458   :  { %v1262_v9 = vld [vmem:[#allocation7 + $0x10] sm:$0xff] }
 0x459   :  { %1016 = vmatmul.f32.vlgmr.msrb.gmra.mxu0 %v996_v20  ;;  %1036 = vmatmul.f32.vlgmr.msrb.gmra.mxu1 %v996_v20 }
 0x45a   :  { %1056 = vmatmul.f32.vlgmr.msrb.gmra.mxu2 %v996_v20 }
 0x45b   :  { %1246 = vmatpush.msra.mxu2 %v1227_v59  ;;  %v1260_v59 = vld [vmem:[#allocation7] sm:$0xff] }
 0x45d   :  { %1247 = vmatpush.msra.mxu2 %v1226_v12  ;;  %v1360_v12 = vld [vmem:[%s2446_s7] ss:$0 sm:$0xff] }
 0x45f   :  { %1248 = vmatpush.msra.mxu2 %v1225_v4 }
 0x4d6   :  { %v1017_v33 = vpop.f32.mrf.mxu0  ;;  %v1037_v11 = vpop.f32.mrf.mxu1 }
 0x4d7   :  { %v1060_v16 = vadd.f32 %v1017_v33, %v2534_v42  ;;  %v1080_v41 = vadd.f32 %v1037_v11, %v260_v35  ;;  %v1224_v35 = vld [vmem:[#allocation5 + $0x28] sm:$0xff]  ;;  %v1222_v42 = vld [vmem:[#allocation5 + $0x18] sm:$0xff] }
 0x4d8   :  { %1249 = vmatpush.msra.mxu2 %v1224_v35 }
 0x4d9   :  { %v1348_v19 = vmul.f32 -1.442695, %v1060_v16  ;;  %v1349_v21 = vmul.f32 -1.442695, %v1080_v41  ;;  %v1221_v41 = vld [vmem:[#allocation5 + $0x10] sm:$0xff] }
 0x4da   :  { %1250 = vmatpush.msra.mxu2 %v1223_v14 }
 0x4db   :  { %1422 = vpow2.f32 %v1348_v19  ;;  %v1220_v19 = vld [vmem:[#allocation5 + $0x8] sm:$0xff] }
 0x4dc   :  { %1424 = vpow2.f32 %v1349_v21  ;;  %1251 = vmatpush.msra.mxu2 %v1222_v42 }
 0x4dd   :  { %v1057_v47 = vpop.f32.mrf.mxu2 }
 0x4de   :  { %v1100_v52 = vadd.f32 %v2396_v7, %v1057_v47  ;;  %1252 = vmatpush.msra.mxu2 %v1221_v41 }
 0x4e0   :  { %1253 = vmatpush.msra.mxu2 %v1220_v19 }
 0x4e1   :  { %v1423_v22 = vpop.eup %1422 }
 0x4e2   :  { %v1425_v23 = vpop.eup %1424  ;;  %v1064_v24 = vadd.f32 1.0, %v1423_v22  ;;  %v1219_v22 = vld [vmem:[#allocation5] sm:$0xff] }
 0x4e3   :  { %v1084_v46 = vadd.f32 1.0, %v1425_v23  ;;  %1254 = vmatpush.msra.mxu2 %v1219_v22 }
 0x4e4   :  { %1426 = vrcp.f32 %v1064_v24  ;;  %v1076_v18 = vand.u32 2147483648, %v1064_v24  ;;  %v1074_v40 = vand.u32 2147483647, %v1064_v24  ;;  %vm1070_vm2 = vweird.f32 %v1064_v24 }
 0x4e5   :  { %1428 = vrcp.f32 %v1084_v46  ;;  %v1096_v34 = vand.u32 2147483648, %v1084_v46  ;;  %vm1090_vm6 = vweird.f32 %v1084_v46  ;;  %v1094_v30 = vand.u32 2147483647, %v1084_v46 }
 0x4e6   :  { %v1077_v49 = vor.u32 1.1754944e-38, %v1076_v18  ;;  %vm1075_vm4 = vcmp.eq.f32.partialorder %v1074_v40, 8.507059e+37  ;;  %v1270_v40 = vld [vmem:[#allocation7 + $0x50] sm:$0xff] }
 0x4e7   :  { %v1097_v62 = vor.u32 1.1754944e-38, %v1096_v34  ;;  %vm1095_vm8 = vcmp.eq.f32.partialorder %v1094_v30, 8.507059e+37 }
 0x4ea   :  { %v1427_v25 = vpop.eup %1426 }
 0x4eb   :  { %v1429_v26 = vpop.eup %1428  ;;  %v1066_v27 = vmul.f32 %v1427_v25, %v1064_v24  ;;  %vm1071_vm1 = vweird.f32 %v1427_v25  ;;  %v1275_v24 = vld [vmem:[#allocation7 + $0x78] sm:$0xff] }
 0x4ec   :  { %v1086_v28 = vmul.f32 %v1429_v26, %v1084_v46  ;;  %vm1072_vm3 = vmor %vm1070_vm2, %vm1071_vm1  ;;  %vm1091_vm5 = vweird.f32 %v1429_v26  ;;  %v1274_v46 = vld [vmem:[#allocation7 + $0x70] sm:$0xff]  ;;  %1280 = vmatpush.msrb.mxu3 %v1275_v24 }
 0x4ed   :  { %v1067_v15 = vsub.f32 1.0, %v1066_v27  ;;  %vm1092_vm7 = vmor %vm1090_vm6, %vm1091_vm5 }
 0x4ee   :  { %v1087_v17 = vsub.f32 1.0, %v1086_v28  ;;  %1281 = vmatpush.msrb.mxu3 %v1274_v46  ;;  %v1272_v28 = vld [vmem:[#allocation7 + $0x60] sm:$0xff] }
 0x4ef   :  { %v1068_v37 = vmul.f32 %v1427_v25, %v1067_v15 }
 0x4f0   :  { %v1088_v45 = vmul.f32 %v1429_v26, %v1087_v17  ;;  %v1271_v17 = vld [vmem:[#allocation7 + $0x58] sm:$0xff] }
 0x4f1   :  { %v1069_v48 = vadd.f32 %v1427_v25, %v1068_v37 }
 0x4f2   :  { %v1089_v54 = vadd.f32 %v1429_v26, %v1088_v45 }
 0x4f3   :  { %v1073_v51 = vsel %vm1072_vm3, %v1427_v25, %v1069_v48  ;;  %v1269_v48 = vld [vmem:[#allocation7 + $0x48] sm:$0xff] }
 0x4f4   :  { %v1078_v53 = vsel %vm1075_vm4, %v1077_v49, %v1073_v51  ;;  %v1093_v38 = vsel %vm1092_vm7, %v1429_v26, %v1089_v54  ;;  %v1273_v26 = vld [vmem:[#allocation7 + $0x68] sm:$0xff]  ;;  %v1268_v54 = vld [vmem:[#allocation7 + $0x40] sm:$0xff] }
 0x4f5   :  { %v1101_v1 = vmul.f32 %v1100_v52, %v1078_v53  ;;  %v1098_v60 = vsel %vm1095_vm8, %v1097_v62, %v1093_v38  ;;  %1282 = vmatpush.msrb.mxu3 %v1273_v26  ;;  %v1266_v62 = vld [vmem:[#allocation7 + $0x30] sm:$0xff] }
 0x4f6   :  { %v1104_v36 = vsub.f32 1.0, %v1098_v60  ;;  %v1106_v5 = vmul.f32 %v1098_v60, %v996_v20  ;;  %v2537_v20 = vld [vmem:[#allocation26_spill] sm:$0xff]  ;;  %v2538_v60 = vld [vmem:[#allocation39_spill] sm:$0xff] }
 0x4f7   :  { %v1102_v32 = vadd.f32 %v1101_v1, %v301_v57  ;;  %1283 = vmatpush.msrb.mxu3 %v1272_v28  ;;  %v1267_v1 = vld [vmem:[#allocation7 + $0x38] sm:$0xff] }
 0x4f9   :  { %1430 = vtanh.f32 %v1102_v32  ;;  %1284 = vmatpush.msrb.mxu3 %v1271_v17 }
 0x4fb   :  { %1285 = vmatpush.msrb.mxu3 %v1270_v40 }
 0x4fd   :  { %1286 = vmatpush.msrb.mxu3 %v1269_v48 }
 0x4ff   :  { %v1431_v44 = vpop.eup %1430  ;;  %1287 = vmatpush.msrb.mxu3 %v1268_v54 }
 0x500   :  { %v1105_v3 = vmul.f32 %v1431_v44, %v1104_v36  ;;  %v304_v36 = vadd.f32 %v2538_v60, %v2055_v50 }
 0x501   :  { %1288 = vmatpush.msrb.mxu3 %v1267_v1 }
 0x502   :  { %v2408_v39 = vadd.f32 %v1106_v5, %v1105_v3 }
 0x503   :  { %1289 = vmatpush.msrb.mxu3 %v1266_v62 }
 0x504   :  { %1127 = vmatmul.f32.vlgmr.msra.gmra.mxu3 %v2408_v39  ;;  %1147 = vmatmul.f32.vlgmr.msra.gmra.mxu0 %v2408_v39 }
 0x505   :  { %1167 = vmatmul.f32.vlgmr.msra.gmra.mxu1 %v2408_v39  ;;  %1290 = vmatpush.msrb.mxu3 %v1265_v8 }
 0x507   :  { %1291 = vmatpush.msrb.mxu3 %v1264_v6 }
 0x509   :  { %1292 = vmatpush.msrb.mxu3 %v1263_v55 }
 0x50b   :  { %1293 = vmatpush.msrb.mxu3 %v1262_v9 }
 0x581   :  { %v1148_v2 = vpop.f32.mrf.mxu0 }
 0x582   :  { %v1191_v61 = vadd.f32 %v1148_v2, %v263_v43  ;;  %v1168_v53 = vpop.f32.mrf.mxu1 }
 0x583   :  { %v1211_v34 = vadd.f32 %v2396_v7, %v1168_v53 }
 0x584   :  { %v1351_v0 = vmul.f32 -1.442695, %v1191_v61 }
 0x586   :  { %1432 = vpow2.f32 %v1351_v0  ;;  %v1261_v0 = vld [vmem:[#allocation7 + $0x8] sm:$0xff] }
 0x587   :  { %v1128_v13 = vpop.f32.mrf.mxu3  ;;  %1294 = vmatpush.msrb.mxu3 %v1261_v0 }
 0x588   :  { %v1171_v31 = vadd.f32 %v1128_v13, %v2537_v20 }
 0x589   :  { %1295 = vmatpush.msrb.mxu3 %v1260_v59 }
 0x58a   :  { %v1350_v33 = vmul.f32 -1.442695, %v1171_v31 }
 0x58c   :  { %v1433_v11 = vpop.eup %1432  ;;  %1434 = vpow2.f32 %v1350_v33 }
 0x58d   :  { %v2416_v16 = vadd.f32 1.0, %v1433_v11 }
 0x58f   :  { %1436 = vrcp.f32 %v2416_v16  ;;  %v1207_v44 = vand.u32 2147483648, %v2416_v16  ;;  %vm1201_vm14 = vweird.f32 %v2416_v16  ;;  %v1205_v5 = vand.u32 2147483647, %v2416_v16 }
 0x591   :  { %v1208_v58 = vor.u32 1.1754944e-38, %v1207_v44  ;;  %vm1206_vm0 = vcmp.eq.f32.partialorder %v1205_v5, 8.507059e+37 }
 0x592   :  { %v1435_v21 = vpop.eup %1434 }
 0x593   :  { %v1175_v23 = vadd.f32 1.0, %v1435_v21 }
 0x595   :  { %1438 = vrcp.f32 %v1175_v23  ;;  %v1437_v25 = vpop.eup %1436  ;;  %v1187_v47 = vand.u32 2147483648, %v1175_v23  ;;  %v1185_v51 = vand.u32 2147483647, %v1175_v23  ;;  %vm1181_vm10 = vweird.f32 %v1175_v23 }
 0x596   :  { %v1197_v27 = vmul.f32 %v1437_v25, %v2416_v16  ;;  %vm1202_vm13 = vweird.f32 %v1437_v25 }
 0x597   :  { %v1188_v57 = vor.u32 1.1754944e-38, %v1187_v47  ;;  %vm1186_vm12 = vcmp.eq.f32.partialorder %v1185_v51, 8.507059e+37  ;;  %vm1203_vm15 = vmor %vm1201_vm14, %vm1202_vm13 }
 0x598   :  { %v1198_v37 = vsub.f32 1.0, %v1197_v27 }
 0x59a   :  { %v1199_v52 = vmul.f32 %v1437_v25, %v1198_v37 }
 0x59b   :  { %v1439_v15 = vpop.eup %1438 }
 0x59c   :  { %v1177_v18 = vmul.f32 %v1439_v15, %v1175_v23  ;;  %vm1182_vm9 = vweird.f32 %v1439_v15  ;;  %v1200_v38 = vadd.f32 %v1437_v25, %v1199_v52 }
 0x59d   :  { %vm1183_vm11 = vmor %vm1181_vm10, %vm1182_vm9 }
 0x59e   :  { %v1178_v45 = vsub.f32 1.0, %v1177_v18  ;;  %v1204_v10 = vsel %vm1203_vm15, %v1437_v25, %v1200_v38 }
 0x59f   :  { %v1209_v50 = vsel %vm1206_vm0, %v1208_v58, %v1204_v10 }
 0x5a0   :  { %v1179_v49 = vmul.f32 %v1439_v15, %v1178_v45  ;;  %v1215_v63 = vsub.f32 1.0, %v1209_v50  ;;  %v1217_v2 = vmul.f32 %v1209_v50, %v2408_v39  ;;  %v1361_v39 = vld [vmem:[%s2448_s9] ss:$0 sm:$0xff] }
 0x5a2   :  { %v1180_v56 = vadd.f32 %v1439_v15, %v1179_v49 }
 0x5a4   :  { %v1184_v30 = vsel %vm1183_vm11, %v1439_v15, %v1180_v56 }
 0x5a5   :  { %v1189_v32 = vsel %vm1186_vm12, %v1188_v57, %v1184_v30 }
 0x5a6   :  { %v1212_v3 = vmul.f32 %v1211_v34, %v1189_v32 }
 0x5a8   :  { %v1213_v7 = vadd.f32 %v1212_v3, %v304_v36 }
 0x5aa   :  { %1440 = vtanh.f32 %v1213_v7 }
 0x5b0   :  { %v1441_v43 = vpop.eup %1440 }
 0x5b1   :  { %v1216_v29 = vmul.f32 %v1441_v43, %v1215_v63 }
 0x5b3   :  { %v1218_v61 = vadd.f32 %v1217_v2, %v1216_v29 }
 0x5b5   :  { %1255 = vmatmul.f32.vlgmr.msra.gmra.mxu2 %v1218_v61  ;;  %1301 = vst [vmem:[%s2450_s11] sm:$0xff] %v1218_v61 }
 0x638   :  { %v1256_v4 = vpop.f32.mrf.mxu2 }
 0x639   :  { %v1257_v13 = vadd.f32 %v1360_v12, %v1256_v4 }
 0x63b   :  { %v1259_v20 = vmax.f32 %v1257_v13, 0.0 }
 0x63d   :  { %1296 = vmatmul.f32.vlgmr.msrb.gmra.mxu3 %v1259_v20 }
 0x6c0   :  { %v1297_v31 = vpop.f32.mrf.mxu3 }
 0x6c1   :  { %v1298_v35 = vadd.f32 %v1361_v39, %v1297_v31 }
 0x6c3   :  { %1300 = vst [vmem:[%s2449_s10] sm:$0xff] %v1298_v35 }
 0x6c4   :  { %1310 = vsyncpa [#allocation4], 1 }
 0x6c5   :  { %1311 = vsyncpa [#allocation6], 1 }

</bundles_post_ra>
